<compile_context>
chip_gen: v6e
topology: v6e:2x2x1
jax: 0.10.0
libtpu: 0.0.40
codegen_flags: <defaults>
</compile_context>

<pallas_src>
import math
from functools import partial

import numpy as np
import jax
import jax.numpy as jnp
from jax.experimental import pallas as pl
from jax.experimental.pallas import tpu as pltpu


# --------------------------------------------------------------------------- #
# Shared: dynamic-filter generation (pool -> 1x1 conv -> channel FilterNorm).
# --------------------------------------------------------------------------- #
def _dyn_filters(pooled, w_ref, b_ref, std_ref, mean_ref, k):
    """pooled: (Bt, C) f32.  Params are tap-major (column j*C + c).

    Returns a list of KK filters, each (Bt, C) f32.
    """
    kk = k * k
    bt, c = pooled.shape

    if c <= 32:
        # Tiny contraction: exact f32 FMAs on the VPU.  An MXU matvec with
        # K=C<=32 and N=Bt would be pure pipeline-fill at ~0% utilization.
        wraw = b_ref[...].astype(jnp.float32)                 # (1, KK*C)
        for ci in range(c):
            wraw = wraw + pooled[:, ci:ci + 1] * w_ref[ci:ci + 1, :].astype(jnp.float32)
    else:
        wraw = jnp.dot(pooled, w_ref[...].astype(jnp.float32),
                       preferred_element_type=jnp.float32) + b_ref[...].astype(jnp.float32)

    # Channel FilterNorm across the KK taps of each (image, channel).
    taps = [wraw[:, j * c:(j + 1) * c] for j in range(kk)]    # KK x (Bt, C)
    mu = taps[0]
    for j in range(1, kk):
        mu = mu + taps[j]
    mu = mu * (1.0 / kk)

    cen = [t - mu for t in taps]
    var = cen[0] * cen[0]
    for j in range(1, kk):
        var = var + cen[j] * cen[j]
    var = var * (1.0 / max(kk - 1, 1))                        # torch: unbiased std
    inv_sd = 1.0 / (jnp.sqrt(var) + 1e-10)                    # eps outside sqrt (torch)

    filts = []
    for j in range(kk):
        f = (cen[j] * inv_sd
             * std_ref[:, j * c:(j + 1) * c].astype(jnp.float32)
             + mean_ref[:, j * c:(j + 1) * c].astype(jnp.float32))   # (Bt, C)
        filts.append(f)
    return filts


# --------------------------------------------------------------------------- #
# Fast path: stride == 1 and "same" output size.  Lane-dense flat layout.
# --------------------------------------------------------------------------- #
def _dtf_same_kernel(x_ref, w_ref, b_ref, std_ref, mean_ref, mask_ref,
                     o_ref, xs_ref, *, k, pad, h, w):
    # x_ref / o_ref: (Bt, C, H*W); xs_ref: (Bt, C, H*W + 2*padf) f32 scratch.
    hw = h * w
    padf = (xs_ref.shape[2] - hw) // 2

    xv = x_ref[...].astype(jnp.float32)                        # (Bt, C, HW)

    # In-kernel zero padding: zero the flat scratch, write the image interior.
    xs_ref[...] = jnp.zeros_like(xs_ref)
    xs_ref[:, :, padf:padf + hw] = xv

    # 1) adaptive average pool -> (Bt, C)
    pooled = jnp.sum(xv, axis=2) * (1.0 / hw)

    # 2) + 3) dynamic per-(image, channel) filters, KK x (Bt, C)
    filts = _dyn_filters(pooled, w_ref, b_ref, std_ref, mean_ref, k)

    # 4) depthwise conv = KK shifted, edge-masked MACs on the flat lane axis.
    #    Windows are read from the scratch ref per tap (no materialized padded
    #    image living in vregs); the 0/1 mask kills cross-row wrap + borders.
    acc = jnp.zeros(o_ref.shape, jnp.float32)
    for dy in range(k):
        for dx in range(k):
            j = dy * k + dx
            off = (dy - pad) * w + (dx - pad)
            win = xs_ref[:, :, padf + off: padf + off + hw]    # (Bt, C, HW)
            m = mask_ref[j:j + 1, :][None, :, :]               # (1, 1, HW)
            acc = acc + filts[j][:, :, None] * (win * m)
    o_ref[...] = acc.astype(o_ref.dtype)                       # one dense store


# --------------------------------------------------------------------------- #
# General fallback: arbitrary stride / padding (correct, not lane-optimized).
# --------------------------------------------------------------------------- #
def _dtf_general_kernel(x_ref, w_ref, b_ref, std_ref, mean_ref,
                        o_ref, xs_ref, *, k, stride, pad, h, w, hout, wout):
    # x_ref: (Bt, C, H, W); o_ref: (Bt, C, hout, wout); xs_ref: (Bt, C, Hp, Wp)
    xv = x_ref[...].astype(jnp.float32)
    xs_ref[...] = jnp.zeros_like(xs_ref)
    xs_ref[:, :, pad:pad + h, pad:pad + w] = xv

    pooled = jnp.sum(jnp.sum(xv, axis=3), axis=2) * (1.0 / (h * w))   # (Bt, C)
    filts = _dyn_filters(pooled, w_ref, b_ref, std_ref, mean_ref, k)

    xp = xs_ref[...]
    acc = jnp.zeros(o_ref.shape, jnp.float32)
    for dy in range(k):
        for dx in range(k):
            j = dy * k + dx
            win = xp[:, :,
                     dy:dy + (hout - 1) * stride + 1:stride,
                     dx:dx + (wout - 1) * stride + 1:stride]
            acc = acc + filts[j][:, :, None, None] * win
    o_ref[...] = acc.astype(o_ref.dtype)


# --------------------------------------------------------------------------- #
# Wrapper.
# --------------------------------------------------------------------------- #
def _pick_bt(batch, c, h, w, itemsize, target_block_bytes=1 << 21):
    """Images per grid step: MiB-scale blocks, grid >= 2 when possible (v7x)."""
    per_image = c * h * w * max(int(itemsize), 4)      # compute/scratch is f32
    bt = max(1, int(target_block_bytes // max(per_image, 1)))
    bt = min(bt, batch)
    if batch >= 2:
        bt = min(bt, batch // 2)                       # keep both v7x TCs busy
    bt = max(bt, 1)
    while batch % bt:
        bt -= 1
    return bt


def dtf_forward(x, w_conv, b_conv, std_p, mean_p,
                *, kernel_size, stride=1, padding=1):
    """x: (B, C, H, W); w_conv: (C*K*K, C); b_conv/std_p/mean_p: (C*K*K,)."""
    B, C, H, W = x.shape
    k = kernel_size
    KK = k * k
    hout = (H + 2 * padding - k) // stride + 1
    wout = (W + 2 * padding - k) // stride + 1

    # Tap-major reorder (column j*C + c  <->  conv output channel c*KK + j) so
    # the kernel only takes contiguous lane slices, never reshapes/transposes.
    w_t = w_conv.reshape(C, KK, C).transpose(2, 1, 0).reshape(C, KK * C)
    b_r = b_conv.reshape(C, KK).T.reshape(1, KK * C)
    std_r = std_p.reshape(C, KK).T.reshape(1, KK * C)
    mean_r = mean_p.reshape(C, KK).T.reshape(1, KK * C)

    bt = _pick_bt(B, C, H, W, x.dtype.itemsize)
    grid = (B // bt,)

    flops = B * (2 * C * C * KK + 3 * C * hout * wout * KK + C * H * W)
    bytes_accessed = int(x.dtype.itemsize) * (x.size + B * C * hout * wout) \
        + 4 * (C * KK * C + 3 * KK * C + KK * H * W)
    cost = pl.CostEstimate(flops=flops, transcendentals=B * C,
                           bytes_accessed=bytes_accessed)
    cparams = pltpu.CompilerParams(dimension_semantics=("parallel",))

    same = (stride == 1 and hout == H and wout == W)

    if same:
        HW = H * W
        padf = max(padding, k - 1 - padding) * (W + 1)   # headroom for tap offsets

        # Precomputed per-tap edge-validity mask (constant, tiny, VMEM-resident).
        ys, xs = np.meshgrid(np.arange(H), np.arange(W), indexing="ij")
        rows = []
        for dy in range(k):
            for dx in range(k):
                sy = ys + dy - padding
                sx = xs + dx - padding
                valid = (sy >= 0) & (sy < H) & (sx >= 0) & (sx < W)
                rows.append(valid.astype(np.float32).reshape(-1))
        tap_mask = jnp.asarray(np.stack(rows, axis=0))   # (KK, H*W)

        x_flat = x.reshape(B, C, HW)                     # free metadata reshape
        kern = partial(_dtf_same_kernel, k=k, pad=padding, h=H, w=W)

        out_flat = pl.pallas_call(
            kern,
            out_shape=jax.ShapeDtypeStruct((B, C, HW), x.dtype),
            grid=grid,
            in_specs=[
                pl.BlockSpec((bt, C, HW), lambda i: (i, 0, 0)),      # x (flat)
                pl.BlockSpec((C, KK * C), lambda i: (0, 0)),         # conv weight
                pl.BlockSpec((1, KK * C), lambda i: (0, 0)),         # conv bias
                pl.BlockSpec((1, KK * C), lambda i: (0, 0)),         # FilterNorm std
                pl.BlockSpec((1, KK * C), lambda i: (0, 0)),         # FilterNorm mean
                pl.BlockSpec((KK, HW), lambda i: (0, 0)),            # tap edge mask
            ],
            out_specs=pl.BlockSpec((bt, C, HW), lambda i: (i, 0, 0)),
            scratch_shapes=[pltpu.VMEM((bt, C, HW + 2 * padf), jnp.float32)],
            compiler_params=cparams,
            cost_estimate=cost,
        )(x_flat, w_t, b_r, std_r, mean_r, tap_mask)
        return out_flat.reshape(B, C, hout, wout)

    # General (stride > 1 or non-"same" padding) fallback.
    Hp, Wp = H + 2 * padding, W + 2 * padding
    kern = partial(_dtf_general_kernel, k=k, stride=stride, pad=padding,
                   h=H, w=W, hout=hout, wout=wout)
    return pl.pallas_call(
        kern,
        out_shape=jax.ShapeDtypeStruct((B, C, hout, wout), x.dtype),
        grid=grid,
        in_specs=[
            pl.BlockSpec((bt, C, H, W), lambda i: (i, 0, 0, 0)),
            pl.BlockSpec((C, KK * C), lambda i: (0, 0)),
            pl.BlockSpec((1, KK * C), lambda i: (0, 0)),
            pl.BlockSpec((1, KK * C), lambda i: (0, 0)),
            pl.BlockSpec((1, KK * C), lambda i: (0, 0)),
        ],
        out_specs=pl.BlockSpec((bt, C, hout, wout), lambda i: (i, 0, 0, 0)),
        scratch_shapes=[pltpu.VMEM((bt, C, Hp, Wp), jnp.float32)],
        compiler_params=cparams,
        cost_estimate=cost,
    )(x, w_t, b_r, std_r, mean_r)


# --------------------------------------------------------------------------- #
# Pure-JAX reference mirroring the PyTorch forward exactly.
# --------------------------------------------------------------------------- #
def reference_forward(x, w_conv, b_conv, std_p, mean_p, k, stride, padding):
    B, C, H, W = x.shape
    KK = k * k
    pooled = x.mean(axis=(2, 3))                              # (B, C)
    wraw = jnp.einsum("bc,oc->bo", pooled, w_conv,
                      precision=jax.lax.Precision.HIGHEST) + b_conv
    g = wraw.reshape(B, C, KK)
    mu = g.mean(axis=2, keepdims=True)
    sd = jnp.std(g, axis=2, keepdims=True, ddof=1)            # torch std: unbiased
    gn = (g - mu) / (sd + 1e-10)
    filt = (gn.reshape(B, C * KK) * std_p[None, :] + mean_p[None, :]).reshape(B, C, k, k)
    xp = jnp.pad(x, ((0, 0), (0, 0), (padding, padding), (padding, padding)))
    hout = (H + 2 * padding - k) // stride + 1
    wout = (W + 2 * padding - k) // stride + 1
    out = jnp.zeros((B, C, hout, wout), jnp.float32)
    for dy in range(k):
        for dx in range(k):
            win = xp[:, :,
                     dy:dy + (hout - 1) * stride + 1:stride,
                     dx:dx + (wout - 1) * stride + 1:stride]
            out = out + filt[:, :, dy, dx][:, :, None, None] * win
    return out.astype(x.dtype)


# --------------------------------------------------------------------------- #
if __name__ == "__main__":
    # Small DTF configuration: dim=8 channels, 16x16 spatial, 3x3 dynamic
    # filter, stride 1, padding 1, depthwise grouping (groups == dim).
    B, C, H, W = 2, 8, 16, 16
    KERNEL_SIZE, STRIDE, PADDING = 3, 1, 1
    KK = KERNEL_SIZE * KERNEL_SIZE

    key = jax.random.PRNGKey(0)
    kx, k1, k2, k3, k4 = jax.random.split(key, 5)

    x = jax.random.normal(kx, (B, C, H, W), jnp.float32)

    # Conv2d(dim, dim*k*k, 1) parameters (nn.Conv2d-style init ranges).
    bound = 1.0 / math.sqrt(C)
    w_conv = jax.random.uniform(k1, (C * KK, C), jnp.float32, -bound, bound)
    b_conv = jax.random.uniform(k2, (C * KK,), jnp.float32, -bound, bound)

    # FilterNorm running_std / running_mean parameters.
    gain = math.sqrt(2.0)                      # calculate_gain('relu')
    std_p = jax.random.normal(k3, (C * KK,), jnp.float32) * (gain / KERNEL_SIZE)
    mean_p = jax.random.normal(k4, (C * KK,), jnp.float32)

    out = dtf_forward(x, w_conv, b_conv, std_p, mean_p,
                      kernel_size=KERNEL_SIZE, stride=STRIDE, padding=PADDING)
    out = jax.block_until_ready(out)

    ref = reference_forward(x, w_conv, b_conv, std_p, mean_p,
                            KERNEL_SIZE, STRIDE, PADDING)
    assert out.shape == ref.shape == (B, C, H, W), (out.shape, ref.shape)
    assert jnp.allclose(out, ref, atol=1e-4, rtol=1e-4), "mismatch vs reference"

    print("KERNEL_OK")
</pallas_src>

<mosaic_0001>
module attributes {stable_mosaic.version = 11 : i64} {
  func.func @_dtf_same_kernel(%arg0: i32, %arg1: memref<1x8x256xf32, #tpu.memory_space<vmem>>, %arg2: memref<8x72xf32, #tpu.memory_space<vmem>>, %arg3: memref<1x72xf32, #tpu.memory_space<vmem>>, %arg4: memref<1x72xf32, #tpu.memory_space<vmem>>, %arg5: memref<1x72xf32, #tpu.memory_space<vmem>>, %arg6: memref<9x256xf32, #tpu.memory_space<vmem>>, %arg7: memref<1x8x256xf32, #tpu.memory_space<vmem>>, %arg8: memref<1x8x290xf32, #tpu.memory_space<vmem>>) attributes {dimension_semantics = [#tpu.dimension_semantics<parallel>], iteration_bounds = array<i64: 2>, scalar_prefetch = 0 : i64, scratch_operands = 1 : i64, tpu.core_type = #tpu.core_type<tc>, window_params = [{transform_indices = @transform_0, window_bounds = array<i64: 1, 8, 256>}, {pipeline_mode = #tpu.pipeline_mode<synchronous>, transform_indices = @transform_1, window_bounds = array<i64: 8, 72>}, {pipeline_mode = #tpu.pipeline_mode<synchronous>, transform_indices = @transform_2, window_bounds = array<i64: 1, 72>}, {pipeline_mode = #tpu.pipeline_mode<synchronous>, transform_indices = @transform_3, window_bounds = array<i64: 1, 72>}, {pipeline_mode = #tpu.pipeline_mode<synchronous>, transform_indices = @transform_4, window_bounds = array<i64: 1, 72>}, {pipeline_mode = #tpu.pipeline_mode<synchronous>, transform_indices = @transform_5, window_bounds = array<i64: 9, 256>}, {transform_indices = @transform_6, window_bounds = array<i64: 1, 8, 256>}]} {
    %c0 = arith.constant 0 : index
    %c0_0 = arith.constant 0 : index
    %c0_1 = arith.constant 0 : index
    %0 = vector.load %arg1[%c0, %c0_0, %c0_1] : memref<1x8x256xf32, #tpu.memory_space<vmem>>, vector<1x8x256xf32>
    %cst = arith.constant 0.000000e+00 : f32
    %1 = vector.broadcast %cst : f32 to vector<1x8x290xf32>
    %c0_2 = arith.constant 0 : index
    %c0_3 = arith.constant 0 : index
    %c0_4 = arith.constant 0 : index
    %2 = vector.load %arg8[%c0_2, %c0_3, %c0_4] : memref<1x8x290xf32, #tpu.memory_space<vmem>>, vector<1x8x290xf32>
    tpu.vector_store %arg8[%c0_2, %c0_3, %c0_4], %1 {strides = array<i32>} : memref<1x8x290xf32, #tpu.memory_space<vmem>>, vector<1x8x290xf32>,
    %c0_5 = arith.constant 0 : index
    %c0_6 = arith.constant 0 : index
    %c17 = arith.constant 17 : index
    %3 = vector.load %arg8[%c0_5, %c0_6, %c17] : memref<1x8x290xf32, #tpu.memory_space<vmem>>, vector<1x8x256xf32>
    tpu.vector_store %arg8[%c0_5, %c0_6, %c17], %0 {strides = array<i32>} : memref<1x8x290xf32, #tpu.memory_space<vmem>>, vector<1x8x256xf32>,
    %cst_7 = arith.constant dense<0.000000e+00> : vector<1x8xf32>
    %4 = vector.multi_reduction <add>, %0, %cst_7 [2] : vector<1x8x256xf32> to vector<1x8xf32>
    %cst_8 = arith.constant 3.906250e-03 : f32
    %5 = vector.broadcast %cst_8 : f32 to vector<1x8xf32>
    %6 = arith.mulf %4, %5 : vector<1x8xf32>
    %c0_9 = arith.constant 0 : index
    %c0_10 = arith.constant 0 : index
    %7 = vector.load %arg3[%c0_9, %c0_10] : memref<1x72xf32, #tpu.memory_space<vmem>>, vector<1x72xf32>
    %8 = vector.extract_strided_slice %6 {offsets = [0, 0], sizes = [1, 1], strides = [1, 1]} : vector<1x8xf32> to vector<1x1xf32>
    %c0_11 = arith.constant 0 : index
    %c0_12 = arith.constant 0 : index
    %9 = vector.load %arg2[%c0_11, %c0_12] : memref<8x72xf32, #tpu.memory_space<vmem>>, vector<1x72xf32>
    %10 = vector.broadcast %8 : vector<1x1xf32> to vector<1x72xf32>
    %11 = arith.mulf %10, %9 : vector<1x72xf32>
    %12 = arith.addf %7, %11 : vector<1x72xf32>
    %13 = vector.extract_strided_slice %6 {offsets = [0, 1], sizes = [1, 1], strides = [1, 1]} : vector<1x8xf32> to vector<1x1xf32>
    %c1 = arith.constant 1 : index
    %c0_13 = arith.constant 0 : index
    %14 = vector.load %arg2[%c1, %c0_13] : memref<8x72xf32, #tpu.memory_space<vmem>>, vector<1x72xf32>
    %15 = vector.broadcast %13 : vector<1x1xf32> to vector<1x72xf32>
    %16 = arith.mulf %15, %14 : vector<1x72xf32>
    %17 = arith.addf %12, %16 : vector<1x72xf32>
    %18 = vector.extract_strided_slice %6 {offsets = [0, 2], sizes = [1, 1], strides = [1, 1]} : vector<1x8xf32> to vector<1x1xf32>
    %c2 = arith.constant 2 : index
    %c0_14 = arith.constant 0 : index
    %19 = vector.load %arg2[%c2, %c0_14] : memref<8x72xf32, #tpu.memory_space<vmem>>, vector<1x72xf32>
    %20 = vector.broadcast %18 : vector<1x1xf32> to vector<1x72xf32>
    %21 = arith.mulf %20, %19 : vector<1x72xf32>
    %22 = arith.addf %17, %21 : vector<1x72xf32>
    %23 = vector.extract_strided_slice %6 {offsets = [0, 3], sizes = [1, 1], strides = [1, 1]} : vector<1x8xf32> to vector<1x1xf32>
    %c3 = arith.constant 3 : index
    %c0_15 = arith.constant 0 : index
    %24 = vector.load %arg2[%c3, %c0_15] : memref<8x72xf32, #tpu.memory_space<vmem>>, vector<1x72xf32>
    %25 = vector.broadcast %23 : vector<1x1xf32> to vector<1x72xf32>
    %26 = arith.mulf %25, %24 : vector<1x72xf32>
    %27 = arith.addf %22, %26 : vector<1x72xf32>
    %28 = vector.extract_strided_slice %6 {offsets = [0, 4], sizes = [1, 1], strides = [1, 1]} : vector<1x8xf32> to vector<1x1xf32>
    %c4 = arith.constant 4 : index
    %c0_16 = arith.constant 0 : index
    %29 = vector.load %arg2[%c4, %c0_16] : memref<8x72xf32, #tpu.memory_space<vmem>>, vector<1x72xf32>
    %30 = vector.broadcast %28 : vector<1x1xf32> to vector<1x72xf32>
    %31 = arith.mulf %30, %29 : vector<1x72xf32>
    %32 = arith.addf %27, %31 : vector<1x72xf32>
    %33 = vector.extract_strided_slice %6 {offsets = [0, 5], sizes = [1, 1], strides = [1, 1]} : vector<1x8xf32> to vector<1x1xf32>
    %c5 = arith.constant 5 : index
    %c0_17 = arith.constant 0 : index
    %34 = vector.load %arg2[%c5, %c0_17] : memref<8x72xf32, #tpu.memory_space<vmem>>, vector<1x72xf32>
    %35 = vector.broadcast %33 : vector<1x1xf32> to vector<1x72xf32>
    %36 = arith.mulf %35, %34 : vector<1x72xf32>
    %37 = arith.addf %32, %36 : vector<1x72xf32>
    %38 = vector.extract_strided_slice %6 {offsets = [0, 6], sizes = [1, 1], strides = [1, 1]} : vector<1x8xf32> to vector<1x1xf32>
    %c6 = arith.constant 6 : index
    %c0_18 = arith.constant 0 : index
    %39 = vector.load %arg2[%c6, %c0_18] : memref<8x72xf32, #tpu.memory_space<vmem>>, vector<1x72xf32>
    %40 = vector.broadcast %38 : vector<1x1xf32> to vector<1x72xf32>
    %41 = arith.mulf %40, %39 : vector<1x72xf32>
    %42 = arith.addf %37, %41 : vector<1x72xf32>
    %43 = vector.extract_strided_slice %6 {offsets = [0, 7], sizes = [1, 1], strides = [1, 1]} : vector<1x8xf32> to vector<1x1xf32>
    %c7 = arith.constant 7 : index
    %c0_19 = arith.constant 0 : index
    %44 = vector.load %arg2[%c7, %c0_19] : memref<8x72xf32, #tpu.memory_space<vmem>>, vector<1x72xf32>
    %45 = vector.broadcast %43 : vector<1x1xf32> to vector<1x72xf32>
    %46 = arith.mulf %45, %44 : vector<1x72xf32>
    %47 = arith.addf %42, %46 : vector<1x72xf32>
    %48 = vector.extract_strided_slice %47 {offsets = [0, 0], sizes = [1, 8], strides = [1, 1]} : vector<1x72xf32> to vector<1x8xf32>
    %49 = vector.extract_strided_slice %47 {offsets = [0, 8], sizes = [1, 8], strides = [1, 1]} : vector<1x72xf32> to vector<1x8xf32>
    %50 = vector.extract_strided_slice %47 {offsets = [0, 16], sizes = [1, 8], strides = [1, 1]} : vector<1x72xf32> to vector<1x8xf32>
    %51 = vector.extract_strided_slice %47 {offsets = [0, 24], sizes = [1, 8], strides = [1, 1]} : vector<1x72xf32> to vector<1x8xf32>
    %52 = vector.extract_strided_slice %47 {offsets = [0, 32], sizes = [1, 8], strides = [1, 1]} : vector<1x72xf32> to vector<1x8xf32>
    %53 = vector.extract_strided_slice %47 {offsets = [0, 40], sizes = [1, 8], strides = [1, 1]} : vector<1x72xf32> to vector<1x8xf32>
    %54 = vector.extract_strided_slice %47 {offsets = [0, 48], sizes = [1, 8], strides = [1, 1]} : vector<1x72xf32> to vector<1x8xf32>
    %55 = vector.extract_strided_slice %47 {offsets = [0, 56], sizes = [1, 8], strides = [1, 1]} : vector<1x72xf32> to vector<1x8xf32>
    %56 = vector.extract_strided_slice %47 {offsets = [0, 64], sizes = [1, 8], strides = [1, 1]} : vector<1x72xf32> to vector<1x8xf32>
    %57 = arith.addf %48, %49 : vector<1x8xf32>
    %58 = arith.addf %57, %50 : vector<1x8xf32>
    %59 = arith.addf %58, %51 : vector<1x8xf32>
    %60 = arith.addf %59, %52 : vector<1x8xf32>
    %61 = arith.addf %60, %53 : vector<1x8xf32>
    %62 = arith.addf %61, %54 : vector<1x8xf32>
    %63 = arith.addf %62, %55 : vector<1x8xf32>
    %64 = arith.addf %63, %56 : vector<1x8xf32>
    %cst_20 = arith.constant 0.111111112 : f32
    %65 = vector.broadcast %cst_20 : f32 to vector<1x8xf32>
    %66 = arith.mulf %64, %65 : vector<1x8xf32>
    %67 = arith.subf %48, %66 : vector<1x8xf32>
    %68 = arith.subf %49, %66 : vector<1x8xf32>
    %69 = arith.subf %50, %66 : vector<1x8xf32>
    %70 = arith.subf %51, %66 : vector<1x8xf32>
    %71 = arith.subf %52, %66 : vector<1x8xf32>
    %72 = arith.subf %53, %66 : vector<1x8xf32>
    %73 = arith.subf %54, %66 : vector<1x8xf32>
    %74 = arith.subf %55, %66 : vector<1x8xf32>
    %75 = arith.subf %56, %66 : vector<1x8xf32>
    %76 = arith.mulf %67, %67 : vector<1x8xf32>
    %77 = arith.mulf %68, %68 : vector<1x8xf32>
    %78 = arith.addf %76, %77 : vector<1x8xf32>
    %79 = arith.mulf %69, %69 : vector<1x8xf32>
    %80 = arith.addf %78, %79 : vector<1x8xf32>
    %81 = arith.mulf %70, %70 : vector<1x8xf32>
    %82 = arith.addf %80, %81 : vector<1x8xf32>
    %83 = arith.mulf %71, %71 : vector<1x8xf32>
    %84 = arith.addf %82, %83 : vector<1x8xf32>
    %85 = arith.mulf %72, %72 : vector<1x8xf32>
    %86 = arith.addf %84, %85 : vector<1x8xf32>
    %87 = arith.mulf %73, %73 : vector<1x8xf32>
    %88 = arith.addf %86, %87 : vector<1x8xf32>
    %89 = arith.mulf %74, %74 : vector<1x8xf32>
    %90 = arith.addf %88, %89 : vector<1x8xf32>
    %91 = arith.mulf %75, %75 : vector<1x8xf32>
    %92 = arith.addf %90, %91 : vector<1x8xf32>
    %cst_21 = arith.constant 1.250000e-01 : f32
    %93 = vector.broadcast %cst_21 : f32 to vector<1x8xf32>
    %94 = arith.mulf %92, %93 : vector<1x8xf32>
    %95 = math.sqrt %94 : vector<1x8xf32>
    %cst_22 = arith.constant 1.000000e-10 : f32
    %96 = vector.broadcast %cst_22 : f32 to vector<1x8xf32>
    %97 = arith.addf %95, %96 : vector<1x8xf32>
    %cst_23 = arith.constant 1.000000e+00 : f32
    %98 = vector.broadcast %cst_23 : f32 to vector<1x8xf32>
    %99 = arith.divf %98, %97 : vector<1x8xf32>
    %100 = arith.mulf %67, %99 : vector<1x8xf32>
    %c0_24 = arith.constant 0 : index
    %c0_25 = arith.constant 0 : index
    %101 = vector.load %arg4[%c0_24, %c0_25] : memref<1x72xf32, #tpu.memory_space<vmem>>, vector<1x8xf32>
    %102 = arith.mulf %100, %101 : vector<1x8xf32>
    %c0_26 = arith.constant 0 : index
    %c0_27 = arith.constant 0 : index
    %103 = vector.load %arg5[%c0_26, %c0_27] : memref<1x72xf32, #tpu.memory_space<vmem>>, vector<1x8xf32>
    %104 = arith.addf %102, %103 : vector<1x8xf32>
    %105 = arith.mulf %68, %99 : vector<1x8xf32>
    %c0_28 = arith.constant 0 : index
    %c8 = arith.constant 8 : index
    %106 = vector.load %arg4[%c0_28, %c8] : memref<1x72xf32, #tpu.memory_space<vmem>>, vector<1x8xf32>
    %107 = arith.mulf %105, %106 : vector<1x8xf32>
    %c0_29 = arith.constant 0 : index
    %c8_30 = arith.constant 8 : index
    %108 = vector.load %arg5[%c0_29, %c8_30] : memref<1x72xf32, #tpu.memory_space<vmem>>, vector<1x8xf32>
    %109 = arith.addf %107, %108 : vector<1x8xf32>
    %110 = arith.mulf %69, %99 : vector<1x8xf32>
    %c0_31 = arith.constant 0 : index
    %c16 = arith.constant 16 : index
    %111 = vector.load %arg4[%c0_31, %c16] : memref<1x72xf32, #tpu.memory_space<vmem>>, vector<1x8xf32>
    %112 = arith.mulf %110, %111 : vector<1x8xf32>
    %c0_32 = arith.constant 0 : index
    %c16_33 = arith.constant 16 : index
    %113 = vector.load %arg5[%c0_32, %c16_33] : memref<1x72xf32, #tpu.memory_space<vmem>>, vector<1x8xf32>
    %114 = arith.addf %112, %113 : vector<1x8xf32>
    %115 = arith.mulf %70, %99 : vector<1x8xf32>
    %c0_34 = arith.constant 0 : index
    %c24 = arith.constant 24 : index
    %116 = vector.load %arg4[%c0_34, %c24] : memref<1x72xf32, #tpu.memory_space<vmem>>, vector<1x8xf32>
    %117 = arith.mulf %115, %116 : vector<1x8xf32>
    %c0_35 = arith.constant 0 : index
    %c24_36 = arith.constant 24 : index
    %118 = vector.load %arg5[%c0_35, %c24_36] : memref<1x72xf32, #tpu.memory_space<vmem>>, vector<1x8xf32>
    %119 = arith.addf %117, %118 : vector<1x8xf32>
    %120 = arith.mulf %71, %99 : vector<1x8xf32>
    %c0_37 = arith.constant 0 : index
    %c32 = arith.constant 32 : index
    %121 = vector.load %arg4[%c0_37, %c32] : memref<1x72xf32, #tpu.memory_space<vmem>>, vector<1x8xf32>
    %122 = arith.mulf %120, %121 : vector<1x8xf32>
    %c0_38 = arith.constant 0 : index
    %c32_39 = arith.constant 32 : index
    %123 = vector.load %arg5[%c0_38, %c32_39] : memref<1x72xf32, #tpu.memory_space<vmem>>, vector<1x8xf32>
    %124 = arith.addf %122, %123 : vector<1x8xf32>
    %125 = arith.mulf %72, %99 : vector<1x8xf32>
    %c0_40 = arith.constant 0 : index
    %c40 = arith.constant 40 : index
    %126 = vector.load %arg4[%c0_40, %c40] : memref<1x72xf32, #tpu.memory_space<vmem>>, vector<1x8xf32>
    %127 = arith.mulf %125, %126 : vector<1x8xf32>
    %c0_41 = arith.constant 0 : index
    %c40_42 = arith.constant 40 : index
    %128 = vector.load %arg5[%c0_41, %c40_42] : memref<1x72xf32, #tpu.memory_space<vmem>>, vector<1x8xf32>
    %129 = arith.addf %127, %128 : vector<1x8xf32>
    %130 = arith.mulf %73, %99 : vector<1x8xf32>
    %c0_43 = arith.constant 0 : index
    %c48 = arith.constant 48 : index
    %131 = vector.load %arg4[%c0_43, %c48] : memref<1x72xf32, #tpu.memory_space<vmem>>, vector<1x8xf32>
    %132 = arith.mulf %130, %131 : vector<1x8xf32>
    %c0_44 = arith.constant 0 : index
    %c48_45 = arith.constant 48 : index
    %133 = vector.load %arg5[%c0_44, %c48_45] : memref<1x72xf32, #tpu.memory_space<vmem>>, vector<1x8xf32>
    %134 = arith.addf %132, %133 : vector<1x8xf32>
    %135 = arith.mulf %74, %99 : vector<1x8xf32>
    %c0_46 = arith.constant 0 : index
    %c56 = arith.constant 56 : index
    %136 = vector.load %arg4[%c0_46, %c56] : memref<1x72xf32, #tpu.memory_space<vmem>>, vector<1x8xf32>
    %137 = arith.mulf %135, %136 : vector<1x8xf32>
    %c0_47 = arith.constant 0 : index
    %c56_48 = arith.constant 56 : index
    %138 = vector.load %arg5[%c0_47, %c56_48] : memref<1x72xf32, #tpu.memory_space<vmem>>, vector<1x8xf32>
    %139 = arith.addf %137, %138 : vector<1x8xf32>
    %140 = arith.mulf %75, %99 : vector<1x8xf32>
    %c0_49 = arith.constant 0 : index
    %c64 = arith.constant 64 : index
    %141 = vector.load %arg4[%c0_49, %c64] : memref<1x72xf32, #tpu.memory_space<vmem>>, vector<1x8xf32>
    %142 = arith.mulf %140, %141 : vector<1x8xf32>
    %c0_50 = arith.constant 0 : index
    %c64_51 = arith.constant 64 : index
    %143 = vector.load %arg5[%c0_50, %c64_51] : memref<1x72xf32, #tpu.memory_space<vmem>>, vector<1x8xf32>
    %144 = arith.addf %142, %143 : vector<1x8xf32>
    %cst_52 = arith.constant 0.000000e+00 : f32
    %145 = vector.broadcast %cst_52 : f32 to vector<1x8x256xf32>
    %c0_53 = arith.constant 0 : index
    %c0_54 = arith.constant 0 : index
    %c0_55 = arith.constant 0 : index
    %146 = vector.load %arg8[%c0_53, %c0_54, %c0_55] : memref<1x8x290xf32, #tpu.memory_space<vmem>>, vector<1x8x256xf32>
    %c0_56 = arith.constant 0 : index
    %c0_57 = arith.constant 0 : index
    %147 = vector.load %arg6[%c0_56, %c0_57] : memref<9x256xf32, #tpu.memory_space<vmem>>, vector<1x256xf32>
    %148 = vector.shape_cast %147 : vector<1x256xf32> to vector<1x1x256xf32>
    %149 = vector.shape_cast %104 : vector<1x8xf32> to vector<1x8x1xf32>
    %150 = vector.broadcast %148 : vector<1x1x256xf32> to vector<1x8x256xf32>
    %151 = arith.mulf %146, %150 : vector<1x8x256xf32>
    %152 = vector.broadcast %149 : vector<1x8x1xf32> to vector<1x8x256xf32>
    %153 = arith.mulf %152, %151 : vector<1x8x256xf32>
    %154 = arith.addf %145, %153 : vector<1x8x256xf32>
    %c0_58 = arith.constant 0 : index
    %c0_59 = arith.constant 0 : index
    %c1_60 = arith.constant 1 : index
    %155 = vector.load %arg8[%c0_58, %c0_59, %c1_60] : memref<1x8x290xf32, #tpu.memory_space<vmem>>, vector<1x8x256xf32>
    %c1_61 = arith.constant 1 : index
    %c0_62 = arith.constant 0 : index
    %156 = vector.load %arg6[%c1_61, %c0_62] : memref<9x256xf32, #tpu.memory_space<vmem>>, vector<1x256xf32>
    %157 = vector.shape_cast %156 : vector<1x256xf32> to vector<1x1x256xf32>
    %158 = vector.shape_cast %109 : vector<1x8xf32> to vector<1x8x1xf32>
    %159 = vector.broadcast %157 : vector<1x1x256xf32> to vector<1x8x256xf32>
    %160 = arith.mulf %155, %159 : vector<1x8x256xf32>
    %161 = vector.broadcast %158 : vector<1x8x1xf32> to vector<1x8x256xf32>
    %162 = arith.mulf %161, %160 : vector<1x8x256xf32>
    %163 = arith.addf %154, %162 : vector<1x8x256xf32>
    %c0_63 = arith.constant 0 : index
    %c0_64 = arith.constant 0 : index
    %c2_65 = arith.constant 2 : index
    %164 = vector.load %arg8[%c0_63, %c0_64, %c2_65] : memref<1x8x290xf32, #tpu.memory_space<vmem>>, vector<1x8x256xf32>
    %c2_66 = arith.constant 2 : index
    %c0_67 = arith.constant 0 : index
    %165 = vector.load %arg6[%c2_66, %c0_67] : memref<9x256xf32, #tpu.memory_space<vmem>>, vector<1x256xf32>
    %166 = vector.shape_cast %165 : vector<1x256xf32> to vector<1x1x256xf32>
    %167 = vector.shape_cast %114 : vector<1x8xf32> to vector<1x8x1xf32>
    %168 = vector.broadcast %166 : vector<1x1x256xf32> to vector<1x8x256xf32>
    %169 = arith.mulf %164, %168 : vector<1x8x256xf32>
    %170 = vector.broadcast %167 : vector<1x8x1xf32> to vector<1x8x256xf32>
    %171 = arith.mulf %170, %169 : vector<1x8x256xf32>
    %172 = arith.addf %163, %171 : vector<1x8x256xf32>
    %c0_68 = arith.constant 0 : index
    %c0_69 = arith.constant 0 : index
    %c16_70 = arith.constant 16 : index
    %173 = vector.load %arg8[%c0_68, %c0_69, %c16_70] : memref<1x8x290xf32, #tpu.memory_space<vmem>>, vector<1x8x256xf32>
    %c3_71 = arith.constant 3 : index
    %c0_72 = arith.constant 0 : index
    %174 = vector.load %arg6[%c3_71, %c0_72] : memref<9x256xf32, #tpu.memory_space<vmem>>, vector<1x256xf32>
    %175 = vector.shape_cast %174 : vector<1x256xf32> to vector<1x1x256xf32>
    %176 = vector.shape_cast %119 : vector<1x8xf32> to vector<1x8x1xf32>
    %177 = vector.broadcast %175 : vector<1x1x256xf32> to vector<1x8x256xf32>
    %178 = arith.mulf %173, %177 : vector<1x8x256xf32>
    %179 = vector.broadcast %176 : vector<1x8x1xf32> to vector<1x8x256xf32>
    %180 = arith.mulf %179, %178 : vector<1x8x256xf32>
    %181 = arith.addf %172, %180 : vector<1x8x256xf32>
    %c0_73 = arith.constant 0 : index
    %c0_74 = arith.constant 0 : index
    %c17_75 = arith.constant 17 : index
    %182 = vector.load %arg8[%c0_73, %c0_74, %c17_75] : memref<1x8x290xf32, #tpu.memory_space<vmem>>, vector<1x8x256xf32>
    %c4_76 = arith.constant 4 : index
    %c0_77 = arith.constant 0 : index
    %183 = vector.load %arg6[%c4_76, %c0_77] : memref<9x256xf32, #tpu.memory_space<vmem>>, vector<1x256xf32>
    %184 = vector.shape_cast %183 : vector<1x256xf32> to vector<1x1x256xf32>
    %185 = vector.shape_cast %124 : vector<1x8xf32> to vector<1x8x1xf32>
    %186 = vector.broadcast %184 : vector<1x1x256xf32> to vector<1x8x256xf32>
    %187 = arith.mulf %182, %186 : vector<1x8x256xf32>
    %188 = vector.broadcast %185 : vector<1x8x1xf32> to vector<1x8x256xf32>
    %189 = arith.mulf %188, %187 : vector<1x8x256xf32>
    %190 = arith.addf %181, %189 : vector<1x8x256xf32>
    %c0_78 = arith.constant 0 : index
    %c0_79 = arith.constant 0 : index
    %c18 = arith.constant 18 : index
    %191 = vector.load %arg8[%c0_78, %c0_79, %c18] : memref<1x8x290xf32, #tpu.memory_space<vmem>>, vector<1x8x256xf32>
    %c5_80 = arith.constant 5 : index
    %c0_81 = arith.constant 0 : index
    %192 = vector.load %arg6[%c5_80, %c0_81] : memref<9x256xf32, #tpu.memory_space<vmem>>, vector<1x256xf32>
    %193 = vector.shape_cast %192 : vector<1x256xf32> to vector<1x1x256xf32>
    %194 = vector.shape_cast %129 : vector<1x8xf32> to vector<1x8x1xf32>
    %195 = vector.broadcast %193 : vector<1x1x256xf32> to vector<1x8x256xf32>
    %196 = arith.mulf %191, %195 : vector<1x8x256xf32>
    %197 = vector.broadcast %194 : vector<1x8x1xf32> to vector<1x8x256xf32>
    %198 = arith.mulf %197, %196 : vector<1x8x256xf32>
    %199 = arith.addf %190, %198 : vector<1x8x256xf32>
    %c0_82 = arith.constant 0 : index
    %c0_83 = arith.constant 0 : index
    %c32_84 = arith.constant 32 : index
    %200 = vector.load %arg8[%c0_82, %c0_83, %c32_84] : memref<1x8x290xf32, #tpu.memory_space<vmem>>, vector<1x8x256xf32>
    %c6_85 = arith.constant 6 : index
    %c0_86 = arith.constant 0 : index
    %201 = vector.load %arg6[%c6_85, %c0_86] : memref<9x256xf32, #tpu.memory_space<vmem>>, vector<1x256xf32>
    %202 = vector.shape_cast %201 : vector<1x256xf32> to vector<1x1x256xf32>
    %203 = vector.shape_cast %134 : vector<1x8xf32> to vector<1x8x1xf32>
    %204 = vector.broadcast %202 : vector<1x1x256xf32> to vector<1x8x256xf32>
    %205 = arith.mulf %200, %204 : vector<1x8x256xf32>
    %206 = vector.broadcast %203 : vector<1x8x1xf32> to vector<1x8x256xf32>
    %207 = arith.mulf %206, %205 : vector<1x8x256xf32>
    %208 = arith.addf %199, %207 : vector<1x8x256xf32>
    %c0_87 = arith.constant 0 : index
    %c0_88 = arith.constant 0 : index
    %c33 = arith.constant 33 : index
    %209 = vector.load %arg8[%c0_87, %c0_88, %c33] : memref<1x8x290xf32, #tpu.memory_space<vmem>>, vector<1x8x256xf32>
    %c7_89 = arith.constant 7 : index
    %c0_90 = arith.constant 0 : index
    %210 = vector.load %arg6[%c7_89, %c0_90] : memref<9x256xf32, #tpu.memory_space<vmem>>, vector<1x256xf32>
    %211 = vector.shape_cast %210 : vector<1x256xf32> to vector<1x1x256xf32>
    %212 = vector.shape_cast %139 : vector<1x8xf32> to vector<1x8x1xf32>
    %213 = vector.broadcast %211 : vector<1x1x256xf32> to vector<1x8x256xf32>
    %214 = arith.mulf %209, %213 : vector<1x8x256xf32>
    %215 = vector.broadcast %212 : vector<1x8x1xf32> to vector<1x8x256xf32>
    %216 = arith.mulf %215, %214 : vector<1x8x256xf32>
    %217 = arith.addf %208, %216 : vector<1x8x256xf32>
    %c0_91 = arith.constant 0 : index
    %c0_92 = arith.constant 0 : index
    %c34 = arith.constant 34 : index
    %218 = vector.load %arg8[%c0_91, %c0_92, %c34] : memref<1x8x290xf32, #tpu.memory_space<vmem>>, vector<1x8x256xf32>
    %c8_93 = arith.constant 8 : index
    %c0_94 = arith.constant 0 : index
    %219 = vector.load %arg6[%c8_93, %c0_94] : memref<9x256xf32, #tpu.memory_space<vmem>>, vector<1x256xf32>
    %220 = vector.shape_cast %219 : vector<1x256xf32> to vector<1x1x256xf32>
    %221 = vector.shape_cast %144 : vector<1x8xf32> to vector<1x8x1xf32>
    %222 = vector.broadcast %220 : vector<1x1x256xf32> to vector<1x8x256xf32>
    %223 = arith.mulf %218, %222 : vector<1x8x256xf32>
    %224 = vector.broadcast %221 : vector<1x8x1xf32> to vector<1x8x256xf32>
    %225 = arith.mulf %224, %223 : vector<1x8x256xf32>
    %226 = arith.addf %217, %225 : vector<1x8x256xf32>
    %c0_95 = arith.constant 0 : index
    %c0_96 = arith.constant 0 : index
    %c0_97 = arith.constant 0 : index
    %227 = vector.load %arg7[%c0_95, %c0_96, %c0_97] : memref<1x8x256xf32, #tpu.memory_space<vmem>>, vector<1x8x256xf32>
    tpu.vector_store %arg7[%c0_95, %c0_96, %c0_97], %226 {strides = array<i32>} : memref<1x8x256xf32, #tpu.memory_space<vmem>>, vector<1x8x256xf32>,
    return
  }
  func.func @transform_0(%arg0: i32) -> (i32, i32, i32) {
    %c0_i32 = arith.constant 0 : i32
    %c0_i32_0 = arith.constant 0 : i32
    %c0_i32_1 = arith.constant 0 : i32
    return %arg0, %c0_i32, %c0_i32_0 : i32, i32, i32
  }
  func.func @transform_1(%arg0: i32) -> (i32, i32) {
    %c0_i32 = arith.constant 0 : i32
    %c0_i32_0 = arith.constant 0 : i32
    %c0_i32_1 = arith.constant 0 : i32
    return %c0_i32, %c0_i32_0 : i32, i32
  }
  func.func @transform_2(%arg0: i32) -> (i32, i32) {
    %c0_i32 = arith.constant 0 : i32
    %c0_i32_0 = arith.constant 0 : i32
    %c0_i32_1 = arith.constant 0 : i32
    return %c0_i32, %c0_i32_0 : i32, i32
  }
  func.func @transform_3(%arg0: i32) -> (i32, i32) {
    %c0_i32 = arith.constant 0 : i32
    %c0_i32_0 = arith.constant 0 : i32
    %c0_i32_1 = arith.constant 0 : i32
    return %c0_i32, %c0_i32_0 : i32, i32
  }
  func.func @transform_4(%arg0: i32) -> (i32, i32) {
    %c0_i32 = arith.constant 0 : i32
    %c0_i32_0 = arith.constant 0 : i32
    %c0_i32_1 = arith.constant 0 : i32
    return %c0_i32, %c0_i32_0 : i32, i32
  }
  func.func @transform_5(%arg0: i32) -> (i32, i32) {
    %c0_i32 = arith.constant 0 : i32
    %c0_i32_0 = arith.constant 0 : i32
    %c0_i32_1 = arith.constant 0 : i32
    return %c0_i32, %c0_i32_0 : i32, i32
  }
  func.func @transform_6(%arg0: i32) -> (i32, i32, i32) {
    %c0_i32 = arith.constant 0 : i32
    %c0_i32_0 = arith.constant 0 : i32
    %c0_i32_1 = arith.constant 0 : i32
    return %arg0, %c0_i32, %c0_i32_0 : i32, i32, i32
  }
}

</mosaic_0001>

<bundles_post_ra>
// kernel: tpu_custom_call.1
= control target key start
LH: loop header
LB: loop body
LE: loop exit
PB: predicated region body
PF: predicated region fallthrough
CT: control target
= control target key end

     0   :  { %s1959_s0 = inlined_call_operand.hbm [shape: f32[2,8,256], index: 0, kind: input, shape index: {}]   ;;  %s1960_s1 = inlined_call_operand.hbm [shape: f32[8,72], index: 1, kind: input, shape index: {}]   ;;  %s1961_s2 = inlined_call_operand.vmem [shape: f32[1,72], index: 2, kind: input, shape index: {}]   ;;  %s1962_s3 = inlined_call_operand.vmem [shape: f32[1,72], index: 3, kind: input, shape index: {}]   ;;  %s1963_s4 = inlined_call_operand.vmem [shape: f32[1,72], index: 4, kind: input, shape index: {}]   ;;  %s1964_s5 = inlined_call_operand.hbm [shape: f32[9,256], index: 5, kind: input, shape index: {}]   ;;  %s1965_s6 = inlined_call_operand.hbm [shape: f32[2,8,256], index: 6, kind: output, shape index: {}]  }
   0x1   :  { %1971 = sst [smem:[#allocation13_spill]] %s1960_s1 }
   0x2   :  { %11 = vsyncpa [#allocation4], 0 }
   0x3   :  { %13 = vsyncpa [#allocation4 + $0x1], 0 }
   0x4   :  { %14 = vsyncpa [#allocation7], 0 }
   0x5   :  { %15 = vsyncpa [#allocation5], 0 }
   0x6   :  { %17 = vsyncpa [#allocation5 + $0x1], 0  ;;  %s1548_s21 = smov 0   ;;  %s1550_s22 = smov 0  }
   0x7   :  { %s1552_s23 = smov 0   ;;  %s1554_s24 = smov 0  }
   0x8 LB: > { %s1569_s25 = sadd.s32 4294967295, %s1476_s24   ;;  %s1206_s26 = sadd.s32 4294967294, %s1476_s24   ;;  %s1476_s24 = sphi %s1554_s24, %s1991_s24   ;;  %s1472_s23 = sphi %s1552_s23, %s1990_s23   ;;  %s1468_s22 = sphi %s1550_s22, %s1989_s22   ;;  %s1464_s21 = sphi %s1548_s21, %s1988_s21  }
   0x9   : > { %p43_p0 = scmp.ne.s32.totalorder %s1468_s22, %s1464_s21  ;;  %p1966_p1 = scmp.eq.s32.totalorder %s1569_s25, 0 }
   0xa   : > { %p178_p3 = scmp.eq.s32.totalorder %s1206_s26, 1  ;;  %p1207_p5 = scmp.ge.s32.totalorder %s1476_s24, 1 }
   0xb   : > { %p1578_p4 = por %p1966_p1, %p43_p0  ;;  %p185_p7 = scmp.lt.s32.totalorder %s1476_s24, 3 }
   0xc   : > { %p1583_p6 = por %p178_p3, %p43_p0  ;;  %s1478_s30 = smov [#allocation6]  }
   0xd   : > { %s1972_s27 = scalar_select %p1578_p4, 1, 0 }
   0xe   : > { %s1973_s28 = scalar_select %p1583_p6, 1, 0 }
   0xf   : > { %p1588_p8 = pnand %p1207_p5, %p185_p7  ;;  %s198_s7 = sshll.u32 %s1478_s30, 4  ;;  %s199_s7 = int_to_ptr.vmem [resolvable:$true] %s198_s7 }
  0x10   : > { %s1479_s8 = smov [#allocation8]   ;;  %s1339_s11 = scalar_lea.vmem %s199_s7, 128 }
  0x11   : > { %s1974_s29 = scalar_select %p1588_p8, 1, 0 }
  0x12   : > { %p1238_p10 = pneg %p1588_p8  ;;  %s217_s9 = sshll.u32 %s1479_s8, 4  ;;  %s218_s9 = int_to_ptr.vmem [resolvable:$true] %s217_s9 }
  0x13   : > { %p1340_p13 = scmp.ne.s32.totalorder %s199_s7, %s1339_s11  ;;  %p1347_p5 = scmp.lt.s32.totalorder %s199_s7, %s199_s7 }
  0x14   : > { %p1597_p11 = pnand %p1238_p10, %p1966_p1  ;;  %p1348_p7 = scmp.lt.s32.totalorder %s1339_s11, %s1339_s11 }
  0x16   : > { %p1330_p12 = pneg %p1597_p11  ;;  %p1349_p9 = por %p1348_p7, %p1347_p5 }
  0x18   : > { %p1342_p0 = pnand %p1340_p13, %p1330_p12 }
  0x1a   : > { %p1343_p3 = pneg %p1342_p0 }
  0x1c   : > { %p1350_p2 = pnand %p1349_p9, %p1343_p3 }
  0x1e   : > { %1353 = shalt.err (!%p1350_p2)
}
  0x1f   : > { %s1976_s1 = sld [smem:[#allocation13_spill]]  ;;  %s1365_s14 = scalar_lea.vmem %s218_s9, 512 }
  0x20   : > { %p1366_p10 = scmp.ne.s32.totalorder %s218_s9, %s1365_s14  ;;  %p1373_p13 = scmp.lt.s32.totalorder %s218_s9, %s218_s9 }
  0x21   : > { %p1374_p0 = scmp.lt.s32.totalorder %s1365_s14, %s1365_s14 }
  0x22   : > { %p1368_p1 = pnand %p1366_p10, %p1330_p12 }
  0x23   : > { %p1375_p4 = por %p1374_p0, %p1373_p13 }
  0x24   : > { %p1369_p6 = pneg %p1368_p1 }
  0x25   : > { %1241 = dma.hbm_to_vmem [thread:$0]  (!%p1597_p11), %s1976_s1, 128, %s199_s7, [#allocation7]  }
  0x26   : > { %p1376_p8 = pnand %p1375_p4, %p1369_p6 }
  0x28   : > { %1379 = shalt.err (!%p1376_p8)
}
  0x29   : > { %s1480_s15 = smov 256   ;;  %s1481_s16 = smov 16  }
  0x2a   : > { %1244 = dma.hbm_to_vmem [thread:$0]  (!%p1597_p11), %s1964_s5, 512, %s218_s9, [#allocation7], %s1480_s15, %s1480_s15, %s1481_s16  }
  0x2b   : > { %s1620_s19 = sadd.s32 1, %s1476_s24   ;;  %s30_s20 = sadd.s32 1, %s1472_s23 }
  0x2c   : > { %s27_s26 = ssub.s32 %s1476_s24, %s1620_s19  ;;  %p37_p1 = scmp.ne.s32.totalorder %s1472_s23, %s1468_s22 }
  0x2d   : > { %p28_p2 = scmp.eq.s32.totalorder %s27_s26, 0  ;;  %p38_p4 = scmp.eq.s32.totalorder %s1476_s24, 0 }
  0x2e   : > { %p1977_p6 = scmp.eq.s32.totalorder %s1569_s25, 1  ;;  %p1255_p9 = scmp.lt.s32.totalorder %s1476_s24, 2 }
  0x2f   : > { %s1636_s7 = scalar_select %p28_p2, %s1472_s23, %s30_s20  }
  0x30   : > { %p1630_p8 = por %p1977_p6, %p37_p1  ;;  %p39_p12 = por %p38_p4, %p37_p1 }
  0x31   : > { %s231_s8 = sand.u32 1, %s1472_s23   ;;  %s1224_s9 = sshll.u32 %s1476_s24, 8 }
  0x32   : > { %s1978_s30 = scalar_select %p1630_p8, 1, 0 }
  0x33   : > { %s1211_s10 = sshll.u32 %s231_s8, 4  ;;  %s1643_s13 = scalar_lea.hbm %s1959_s0, %s1224_s9 }
  0x34   : > { %s235_s14 = scalar_lea.vmem [#allocation3], %s1211_s10  ;;  %p1645_p11 = pnand %p1255_p9, %p39_p12 }
  0x35   : > { %s243_s15 = sshll.u32 %s235_s14, 4  ;;  %s232_s17 = scalar_lea.sflag [#allocation4], %s231_s8  ;;  %s244_s15 = int_to_ptr.vmem [resolvable:$true] %s243_s15 }
  0x36   : > { %s1380_s18 = scalar_lea.hbm %s1643_s13, 256  ;;  %p1382_p5 = pneg %p1645_p11 }
  0x37   : > { %p1381_p3 = scmp.ne.s32.totalorder %s1643_s13, %s1380_s18  ;;  %s1385_s9 = scalar_lea.hbm %s1959_s0, 512 }
  0x38   : > { %p1386_p13 = scmp.lt.s32.totalorder %s1643_s13, %s1959_s0  ;;  %p1387_p0 = scmp.lt.s32.totalorder %s1385_s9, %s1380_s18 }
  0x39   : > { %p1383_p7 = pnand %p1382_p5, %p1381_p3 }
  0x3a   : > { %p1388_p1 = por %p1387_p0, %p1386_p13 }
  0x3b   : > { %p1384_p10 = pneg %p1383_p7 }
  0x3d   : > { %p1389_p2 = pnand %p1388_p1, %p1384_p10 }
  0x3f   : > { %1392 = shalt.err (!%p1389_p2)
}
  0x40   : > { %s1393_s12 = scalar_lea.vmem %s244_s15, 256  ;;  %s1482_s8 = smov [#allocation3]  }
  0x41   : > { %p1394_p4 = scmp.ne.s32.totalorder %s244_s15, %s1393_s12  ;;  %s1398_s14 = sshll.u32 %s1482_s8, 4  ;;  %s1399_s14 = int_to_ptr.vmem [resolvable:$false] %s1398_s14 }
  0x42   : > { %s1400_s1 = scalar_lea.vmem %s1399_s14, 512  ;;  %p1401_p12 = scmp.lt.s32.totalorder %s244_s15, %s1399_s14 }
  0x43   : > { %p1396_p6 = pnand %p1394_p4, %p1382_p5  ;;  %p1402_p3 = scmp.lt.s32.totalorder %s1400_s1, %s1393_s12 }
  0x45   : > { %p1397_p9 = pneg %p1396_p6  ;;  %p1403_p7 = por %p1402_p3, %p1401_p12 }
  0x47   : > { %p1404_p8 = pnand %p1403_p7, %p1397_p9 }
  0x49   : > { %1407 = shalt.err (!%p1404_p8)
}
  0x4a   : > { %1248 = dma.hbm_to_vmem [thread:$0]  (!%p1645_p11), %s1643_s13, 256, %s244_s15, %s232_s17  }
  0x4b   : > { %p1980_p10 = scmp.ne.s32.totalorder %s1974_s29, 0 }
  0x4c   : > { %s1666_s18 = sand.u32 (!%p1980_p10), 1, %s1468_s22   ;;  %p1981_p5 = scmp.ne.s32.totalorder (!%p1980_p10), %s1972_s27, 0 }
  0x4d   : > { %252 = sbr.rel (%p1980_p10) target bundleno = 1095 (0x447), region = 44  ;;  %s1970_s20 = sshll.u32 (!%p1980_p10), %s1666_s18, 4 }
  0x4e   : > { %s255_s26 = scalar_lea.sflag (!%p1980_p10), [#allocation4], %s1666_s18  ;;  %s258_s1 = scalar_lea.vmem (!%p1980_p10), [#allocation3], %s1970_s20 }
  0x52   : > { %1451 = dma.done.wait (%p1981_p5), %s255_s26, 256  }
  0x53   : > { %1453 = vsyncadd (%p1981_p5), %s255_s26, 4294967040  ;;  %p1982_p8 = scmp.eq.s32.totalorder %s1569_s25, 0 }
  0x55   : > { %1455 = dma.done.wait (%p1982_p8), [#allocation7], 640   ;;  %p1983_p11 = pmov %p1982_p8 }
  0x56   : > { %v1680_v0 = vld [vmem:[%s258_s1] sm:$0xff]  ;;  %v1682_v1 = vld [vmem:[%s258_s1 + $0x8] sm:$0xff]  ;;  %v333_v3 = vlaneseq  ;;  %v1483_v4 = vmov 1966171168   ;;  %s1484_s13 = smov 112   ;;  %s1485_s15 = smov 120  }
  0x57   : > { %1457 = vsyncadd (%p1983_p11), [#allocation7], 4294966656  ;;  %v316_v2 = vadd.f32 %v1682_v1, %v1680_v0  ;;  %v331_v5 = vunpack.c.l.s4 %v1483_v4  ;;  %v324_v6 = vld [vmem:[#allocation6 + $0x1] sm:$0x1]  ;;  %v347_v8 = vld [vmem:[#allocation6 + $0x2] sm:$0x1] }
  0x58   : > { %v1686_v7 = vshrl.u32 %v333_v3, 7  ;;  %v370_v9 = vld [vmem:[#allocation6 + $0x3] sm:$0x1]  ;;  %v394_v10 = vld [vmem:[#allocation6 + $0x4] sm:$0x1]  ;;  %v326_v15 = vrot.slane %v324_v6, 7 }
  0x59   : > { %317 = vadd.xlane.f32.xlu0 %v316_v2  ;;  %v332_v11 = vunpack.c.0.s8 %v331_v5  ;;  %v417_v12 = vld [vmem:[#allocation6 + $0x5] sm:$0x1]  ;;  %v441_v13 = vld [vmem:[#allocation6 + $0x6] sm:$0x1]  ;;  %v465_v14 = vld [vmem:[#allocation6 + $0x7] sm:$0x1] }
  0x5a   : > { %v349_v16 = vrot.slane %v347_v8, 6  ;;  %v372_v17 = vrot.slane %v370_v9, 5  ;;  %v321_v18 = vld [vmem:[#allocation6] sm:$0x1]  ;;  %v396_v19 = vrot.slane %v394_v10, 4  ;;  %v419_v20 = vrot.slane %v417_v12, 3 }
  0x5b   : > { %v443_v21 = vrot.slane %v441_v13, 2  ;;  %v467_v22 = vrot.slane %v465_v14, 1  ;;  %v335_v24 = vsub.s32 %v332_v11, %v1686_v7  ;;  %v320_v34 = vld [vmem:[%s1961_s2] sm:$0x1]  ;;  %s1486_s16 = smov 104   ;;  %s1487_s17 = smov 96  }
  0x5c   : > { %s1488_s9 = smov 88   ;;  %s1489_s11 = smov 80   ;;  %vm299_vm2 = vcmask 277504   ;;  %vm307_vm3 = vcmask 138240   ;;  %vm312_vm4 = vcmask 1047688   ;;  %vm725_vm5 = vcmask 7168  }
  0x5d   : > { %s1490_s10 = smov 72   ;;  %s1491_s12 = smov 64   ;;  %vm775_vm6 = vcmask 15360   ;;  %vm825_vm7 = vcmask 130048   ;;  %vm924_vm8 = vcmask 146432   ;;  %vm974_vm9 = vcmask 261120  }
  0x5e   : > { %s1492_s8 = smov 16   ;;  %s1493_s14 = smov 8   ;;  %vm1024_vm10 = vcmask 269312   ;;  %vm745_vm11 = vcmask 1039360   ;;  %vm795_vm12 = vcmask 1031168   ;;  %vm845_vm13 = vcmask 916480  }
  0x5f   : > { %s1494_s26 = smov 32   ;;  %s1495_s1 = smov 24   ;;  %vm894_vm14 = vcmask 908288   ;;  %vm944_vm15 = vcmask 900096  }
  0x60   : > { %s1496_s27 = smov 48   ;;  %s1497_s29 = smov 40  }
  0x61   : > { %s1498_s20 = smov 56   ;;  %p1985_p0 = scmp.ne.s32.totalorder %s1978_s30, 0 }
  0xe2   : > { %v318_v23 = vpop.xlane.xlu0 %317 }
  0xe3   : > { %v319_v25 = vmul.f32 0.00390625, %v318_v23 }
  0xe5   : > { %v322_v26 = vmul.f32 %v321_v18, %v319_v25  ;;  %v328_v27 = vmul.f32 %v326_v15, %v319_v25  ;;  %v351_v28 = vmul.f32 %v349_v16, %v319_v25  ;;  %v374_v29 = vmul.f32 %v372_v17, %v319_v25 }
  0xe6   : > { %v398_v30 = vmul.f32 %v396_v19, %v319_v25  ;;  %v421_v31 = vmul.f32 %v419_v20, %v319_v25  ;;  %v445_v32 = vmul.f32 %v443_v21, %v319_v25  ;;  %v469_v33 = vmul.f32 %v467_v22, %v319_v25 }
  0xe7   : > { %v336_v35 = vrot.slane %v328_v27, %v335_v24  ;;  %v359_v36 = vrot.slane %v351_v28, %v335_v24  ;;  %v382_v37 = vrot.slane %v374_v29, %v335_v24  ;;  %v323_v45 = vadd.f32 %v322_v26, %v320_v34 }
  0xe8   : > { %v400_v38 = vcombine.high %v398_v30, %v398_v30  ;;  %v423_v39 = vcombine.high %v421_v31, %v421_v31  ;;  %v471_v40 = vcombine.high %v469_v33, %v469_v33  ;;  %v447_v44 = vcombine.high %v445_v32, %v445_v32 }
  0xe9   : > { %v337_v41 = vcombine.high %v336_v35, %v336_v35  ;;  %v366_v42 = vrot.slane %v359_v36, %v335_v24  ;;  %v383_v43 = vcombine.high %v382_v37, %v382_v37 }
  0xea   : > { %v430_v48 = vrot.slane %v423_v39, %v335_v24  ;;  %v478_v49 = vrot.slane %v471_v40, %v335_v24  ;;  %v407_v52 = vrot.slane %v400_v38, %v335_v24  ;;  %v454_v53 = vrot.slane %v447_v44, %v335_v24 }
  0xeb   : > { %v344_v46 = vrot.slane %v337_v41, %v335_v24  ;;  %v390_v47 = vrot.slane %v383_v43, %v335_v24  ;;  %v367_v51 = vcombine.high %v366_v42, %v366_v42 }
  0xec   : > { %v431_v56 = vcombine.high %v430_v48, %v430_v48  ;;  %v479_v57 = vcombine.high %v478_v49, %v478_v49  ;;  %v414_v59 = vrot.slane %v407_v52, %v335_v24  ;;  %v461_v60 = vrot.slane %v454_v53, %v335_v24 }
  0xed   : > { %v346_v50 = vadd.f32 %v344_v46, %v323_v45  ;;  %v391_v55 = vcombine.high %v390_v47, %v390_v47 }
  0xee   : > { %v438_v62 = vrot.slane %v431_v56, %v335_v24  ;;  %v486_v63 = vrot.slane %v479_v57, %v335_v24  ;;  %v462_v3 = vcombine.high %v461_v60, %v461_v60 }
  0xef   : > { %v369_v54 = vadd.f32 %v367_v51, %v346_v50 }
  0xf0   : > { %v487_v5 = vcombine.high %v486_v63, %v486_v63 }
  0xf1   : > { %v393_v58 = vadd.f32 %v391_v55, %v369_v54 }
  0xf3   : > { %v416_v61 = vadd.f32 %v414_v59, %v393_v58 }
  0xf5   : > { %v440_v2 = vadd.f32 %v438_v62, %v416_v61 }
  0xf7   : > { %v464_v4 = vadd.f32 %v462_v3, %v440_v2 }
  0xf9   : > { %v1692_v6 = vadd.f32 %v487_v5, %v464_v4 }
  0xfb   : > { %495 = vrot.lane.b32.xlu1 %v1692_v6, %s1484_s13  ;;  %491 = vrot.lane.b32.xlu0 %v1692_v6, %s1485_s15 }
  0xff   : > { %499 = vrot.lane.b32.xlu1 %v1692_v6, %s1486_s16 }
 0x103   : > { %503 = vrot.lane.b32.xlu1 %v1692_v6, %s1487_s17 }
 0x107   : > { %507 = vrot.lane.b32.xlu1 %v1692_v6, %s1488_s9 }
 0x10b   : > { %511 = vrot.lane.b32.xlu1 %v1692_v6, %s1489_s11 }
 0x10f   : > { %515 = vrot.lane.b32.xlu1 %v1692_v6, %s1490_s10 }
 0x113   : > { %519 = vrot.lane.b32.xlu1 %v1692_v6, %s1491_s12 }
 0x16d   : > { %v496_v8 = vpop.permute.xlu1 %495  ;;  %v492_v9 = vpop.permute.xlu0 %491 }
 0x16e   : > { %v494_v11 = vadd.f32 %v492_v9, %v1692_v6 }
 0x170   : > { %v498_v13 = vadd.f32 %v496_v8, %v494_v11 }
 0x171   : > { %v500_v10 = vpop.permute.xlu1 %499 }
 0x172   : > { %v502_v15 = vadd.f32 %v500_v10, %v498_v13 }
 0x175   : > { %v504_v12 = vpop.permute.xlu1 %503 }
 0x176   : > { %v506_v17 = vadd.f32 %v504_v12, %v502_v15  ;;  %v703_v15 = vld [vmem:[#allocation8 + $0x1] ss:$8 sm:$0x3] }
 0x179   : > { %v508_v14 = vpop.permute.xlu1 %507 }
 0x17a   : > { %v510_v18 = vadd.f32 %v508_v14, %v506_v17  ;;  %v1791_v14 = vsub.s32 1, %v1686_v7  ;;  %v1795_v17 = vsub.s32 0, %v1686_v7  ;;  %v853_v7 = vld [vmem:[#allocation8 + $0x4] ss:$8 sm:$0x3] }
 0x17d   : > { %v512_v16 = vpop.permute.xlu1 %511 }
 0x17e   : > { %v514_v20 = vadd.f32 %v512_v16, %v510_v18  ;;  %v1499_v16 = vmov 0.0   ;;  %v720_v18 = vrot.slane %v703_v15, %v1791_v14 }
 0x17f   : > { %300 = vst.msk [vmem:[#allocation2 + $0x10] sm:$0xff] %vm299_vm2, %v1499_v16  ;;  %297 = vst [vmem:[#allocation2] sm:$0xff] %v1499_v16 }
 0x181   : > { %v516_v19 = vpop.permute.xlu1 %515 }
 0x182   : > { %v518_v21 = vadd.f32 %v516_v19, %v514_v20  ;;  %v716_v19 = vrot.slane %v703_v15, %v1795_v17  ;;  %v753_v20 = vld [vmem:[#allocation8 + $0x2] ss:$8 sm:$0x3] }
 0x185   : > { %v520_v22 = vpop.permute.xlu1 %519 }
 0x186   : > { %v522_v23 = vadd.f32 %v520_v22, %v518_v21  ;;  %v770_v21 = vrot.slane %v753_v20, %v1791_v14  ;;  %v766_v22 = vrot.slane %v753_v20, %v1795_v17 }
 0x188   : > { %v523_v24 = vmul.f32 0.11111111, %v522_v23  ;;  %v803_v23 = vld [vmem:[#allocation8 + $0x3] ss:$8 sm:$0x3] }
 0x18a   : > { %530 = vrot.lane.b32.xlu1 %v523_v24, %s1492_s8  ;;  %526 = vrot.lane.b32.xlu0 %v523_v24, %s1493_s14  ;;  %v1768_v49 = vsub.f32 %v1692_v6, %v523_v24 }
 0x18c   : > { %v558_v50 = vmul.f32 %v1768_v49, %v1768_v49 }
 0x18e   : > { %538 = vrot.lane.b32.xlu1 %v523_v24, %s1494_s26  ;;  %534 = vrot.lane.b32.xlu0 %v523_v24, %s1495_s1 }
 0x192   : > { %546 = vrot.lane.b32.xlu1 %v523_v24, %s1496_s27  ;;  %542 = vrot.lane.b32.xlu0 %v523_v24, %s1497_s29 }
 0x196   : > { %554 = vrot.lane.b32.xlu1 %v523_v24, %s1491_s12  ;;  %550 = vrot.lane.b32.xlu0 %v523_v24, %s1498_s20  ;;  %v870_v24 = vrot.slane %v853_v7, %v1791_v14 }
 0x1fc   : > { %v531_v25 = vpop.permute.xlu1 %530  ;;  %v527_v26 = vpop.permute.xlu0 %526 }
 0x1fd   : > { %v1720_v27 = vsub.f32 %v1692_v6, %v531_v25  ;;  %v1723_v28 = vsub.f32 %v1692_v6, %v527_v26  ;;  %v866_v25 = vrot.slane %v853_v7, %v1795_v17  ;;  %v902_v26 = vld [vmem:[#allocation8 + $0x5] ss:$8 sm:$0x3] }
 0x1ff   : > { %v565_v29 = vmul.f32 %v1720_v27, %v1720_v27  ;;  %v559_v30 = vmul.f32 %v1723_v28, %v1723_v28 }
 0x200   : > { %v539_v31 = vpop.permute.xlu1 %538  ;;  %v535_v32 = vpop.permute.xlu0 %534 }
 0x201   : > { %v1730_v33 = vsub.f32 %v1692_v6, %v539_v31  ;;  %v1733_v34 = vsub.f32 %v1692_v6, %v535_v32  ;;  %567 = vrot.lane.b32.xlu1 %v565_v29, %s1484_s13  ;;  %561 = vrot.lane.b32.xlu0 %v559_v30, %s1485_s15  ;;  %s1500_s15 = smov 17   ;;  %v915_v29 = vrot.slane %v902_v26, %v1795_v17  ;;  %v952_v31 = vld [vmem:[#allocation8 + $0x6] ss:$8 sm:$0x3] }
 0x202   : > { %v919_v30 = vrot.slane %v902_v26, %v1791_v14  ;;  %v969_v32 = vrot.slane %v952_v31, %v1791_v14 }
 0x203   : > { %v577_v35 = vmul.f32 %v1730_v33, %v1730_v33  ;;  %v571_v36 = vmul.f32 %v1733_v34, %v1733_v34 }
 0x204   : > { %v547_v37 = vpop.permute.xlu1 %546  ;;  %v543_v38 = vpop.permute.xlu0 %542 }
 0x205   : > { %v1742_v39 = vsub.f32 %v1692_v6, %v547_v37  ;;  %v1745_v40 = vsub.f32 %v1692_v6, %v543_v38  ;;  %579 = vrot.lane.b32.xlu1 %v577_v35, %s1487_s17  ;;  %573 = vrot.lane.b32.xlu0 %v571_v36, %s1486_s16  ;;  %s1502_s16 = smov 2   ;;  %v965_v35 = vrot.slane %v952_v31, %v1795_v17  ;;  %v1002_v36 = vld [vmem:[#allocation8 + $0x7] ss:$8 sm:$0x3] }
 0x206   : > { %v1015_v37 = vrot.slane %v1002_v36, %v1795_v17  ;;  %v1019_v38 = vrot.slane %v1002_v36, %v1791_v14 }
 0x207   : > { %v589_v41 = vmul.f32 %v1742_v39, %v1742_v39  ;;  %v583_v42 = vmul.f32 %v1745_v40, %v1745_v40 }
 0x208   : > { %v555_v43 = vpop.permute.xlu1 %554  ;;  %v551_v44 = vpop.permute.xlu0 %550 }
 0x209   : > { %v1754_v45 = vsub.f32 %v1692_v6, %v555_v43  ;;  %v1757_v46 = vsub.f32 %v1692_v6, %v551_v44  ;;  %591 = vrot.lane.b32.xlu1 %v589_v41, %s1489_s11  ;;  %585 = vrot.lane.b32.xlu0 %v583_v42, %s1488_s9  ;;  %s1503_s9 = smov 18   ;;  %v1052_v41 = vld [vmem:[#allocation8 + $0x10] ss:$8 sm:$0x3]  ;;  %s1504_s11 = smov 33  }
 0x20a   : > { %v1069_v42 = vrot.slane %v1052_v41, %v1791_v14  ;;  %v1065_v43 = vrot.slane %v1052_v41, %v1795_v17 }
 0x20b   : > { %v601_v47 = vmul.f32 %v1754_v45, %v1754_v45  ;;  %v595_v48 = vmul.f32 %v1757_v46, %v1757_v46 }
 0x20d   : > { %603 = vrot.lane.b32.xlu1 %v601_v47, %s1491_s12  ;;  %597 = vrot.lane.b32.xlu0 %v595_v48, %s1490_s10  ;;  %s1505_s10 = smov 34  }
 0x273   : > { %v568_v51 = vpop.permute.xlu1 %567  ;;  %v562_v52 = vpop.permute.xlu0 %561 }
 0x274   : > { %v564_v53 = vadd.f32 %v562_v52, %v558_v50 }
 0x276   : > { %v570_v54 = vadd.f32 %v568_v51, %v564_v53  ;;  %v619_v51 = vld [vmem:[%s1962_s3] sm:$0x1] }
 0x277   : > { %v580_v55 = vpop.permute.xlu1 %579  ;;  %v574_v56 = vpop.permute.xlu0 %573 }
 0x278   : > { %v576_v57 = vadd.f32 %v574_v56, %v570_v54  ;;  %v621_v56 = vld [vmem:[%s1963_s4] sm:$0x1] }
 0x27a   : > { %v582_v58 = vadd.f32 %v580_v55, %v576_v57 }
 0x27b   : > { %v592_v59 = vpop.permute.xlu1 %591  ;;  %v586_v60 = vpop.permute.xlu0 %585 }
 0x27c   : > { %v588_v61 = vadd.f32 %v586_v60, %v582_v58 }
 0x27e   : > { %v594_v62 = vadd.f32 %v592_v59, %v588_v61 }
 0x27f   : > { %v598_v63 = vpop.permute.xlu0 %597  ;;  %v604_v3 = vpop.permute.xlu1 %603 }
 0x280   : > { %v600_v2 = vadd.f32 %v598_v63, %v594_v62 }
 0x282   : > { %v606_v4 = vadd.f32 %v604_v3, %v600_v2 }
 0x284   : > { %v607_v5 = vmul.f32 0.125, %v606_v4 }
 0x286   : > { %1324 = vrsqrt.f32 %v607_v5  ;;  %vm610_vm0 = vcmp.eq.f32.partialorder %v607_v5, inf  ;;  %v613_v9 = vand.u32 2147483648, %v607_v5  ;;  %vm612_vm1 = vcmp.eq.f32.partialorder %v607_v5, 0.0 }
 0x293   : > { %v1325_v6 = vpop.eup %1324 }
 0x294   : > { %v609_v8 = vmul.f32 %v1325_v6, %v607_v5 }
 0x296   : > { %v611_v10 = vsel %vm610_vm0, %v607_v5, %v609_v8  ;;  %vm994_vm0 = vcmask 785408  }
 0x297   : > { %v614_v11 = vsel %vm612_vm1, %v613_v9, %v611_v10  ;;  %vm1044_vm1 = vcmask 777216  }
 0x298   : > { %v615_v12 = vadd.f32 1e-10, %v614_v11 }
 0x29a   : > { %1326 = vrcp.f32 %v615_v12 }
 0x2a7   : > { %v1772_v13 = vpop.eup %1326 }
 0x2a8   : > { %630 = vrot.lane.b32.xlu1 %v1772_v13, %s1492_s8  ;;  %624 = vrot.lane.b32.xlu0 %v1772_v13, %s1493_s14  ;;  %v618_v12 = vmul.f32 %v1772_v13, %v1768_v49  ;;  %s1103_s14 = scalar_lea.sflag [#allocation5], %s1666_s18 }
 0x2ac   : > { %642 = vrot.lane.b32.xlu1 %v1772_v13, %s1494_s26  ;;  %636 = vrot.lane.b32.xlu0 %v1772_v13, %s1495_s1  ;;  %s1506_s1 = smov 127  }
 0x2b0   : > { %654 = vrot.lane.b32.xlu1 %v1772_v13, %s1496_s27  ;;  %648 = vrot.lane.b32.xlu0 %v1772_v13, %s1497_s29  ;;  %s1507_s27 = smov 126   ;;  %s1508_s29 = smov 111  }
 0x2b4   : > { %666 = vrot.lane.b32.xlu1 %v1772_v13, %s1491_s12  ;;  %660 = vrot.lane.b32.xlu0 %v1772_v13, %s1498_s20  ;;  %s1501_s20 = smov 1  }
 0x2b8   : > { %305 = vrot.lane.b32.xlu1 %v1682_v1, %s1500_s15  ;;  %303 = vrot.lane.b32.xlu0 %v1680_v0, %s1500_s15  ;;  %v816_v1 = vrot.slane %v803_v23, %v1795_v17  ;;  %v820_v0 = vrot.slane %v803_v23, %v1791_v14 }
 0x2bc   : > { %723 = vrot.lane.b32.xlu1 %v720_v18, %s1501_s20  ;;  %721 = vrot.lane.b32.xlu0 %v716_v19, %s1501_s20  ;;  %s1225_s20 = sshll.u32 %s1569_s25, 8 }
 0x2c0   : > { %773 = vrot.lane.b32.xlu1 %v770_v21, %s1502_s16  ;;  %771 = vrot.lane.b32.xlu0 %v766_v22, %s1502_s16  ;;  %v620_v22 = vmul.f32 %v619_v51, %v618_v12  ;;  %s1984_s16 = sshll.u32 %s1666_s18, 4 }
 0x2c2   : > { %v622_v7 = vadd.f32 %v621_v56, %v620_v22 }
 0x2c4   : > { %821 = vrot.lane.b32.xlu1 %v816_v1, %s1492_s8  ;;  %823 = vrot.lane.b32.xlu0 %v820_v0, %s1492_s8  ;;  %v678_v26 = vrot.slane %v622_v7, %v1795_v17  ;;  %s1922_s8 = scalar_lea.hbm %s1965_s6, %s1225_s20 }
 0x2c8   : > { %873 = vrot.lane.b32.xlu1 %v870_v24, %s1500_s15  ;;  %871 = vrot.lane.b32.xlu0 %v866_v25, %s1500_s15  ;;  %s1510_s15 = smov 95  }
 0x2cc   : > { %920 = vrot.lane.b32.xlu1 %v915_v29, %s1503_s9  ;;  %922 = vrot.lane.b32.xlu0 %v919_v30, %s1503_s9  ;;  %s294_s9 = scalar_lea.vmem [#allocation9], %s1984_s16 }
 0x2d0   : > { %972 = vrot.lane.b32.xlu1 %v969_v32, %s1494_s26  ;;  %970 = vrot.lane.b32.xlu0 %v965_v35, %s1494_s26  ;;  %s1512_s26 = smov [#allocation9]  }
 0x2d4   : > { %1020 = vrot.lane.b32.xlu1 %v1015_v37, %s1504_s11  ;;  %1022 = vrot.lane.b32.xlu0 %v1019_v38, %s1504_s11  ;;  %s1117_s11 = sshll.u32 %s294_s9, 4  ;;  %s1118_s11 = int_to_ptr.vmem [resolvable:$true] %s1117_s11 }
 0x2d5   : > { %s1408_s25 = scalar_lea.vmem %s1118_s11, 256 }
 0x2d6   : > { %p1409_p13 = scmp.ne.s32.totalorder %s1118_s11, %s1408_s25 }
 0x2d8   : > { %1072 = vrot.lane.b32.xlu1 %v1069_v42, %s1505_s10  ;;  %1070 = vrot.lane.b32.xlu0 %v1065_v43, %s1505_s10  ;;  %p1410_p1 = pnand %p1409_p13, %p1985_p0 }
 0x2da   : > { %p1411_p2 = pneg %p1410_p1 }
 0x31a   : > { %v631_v44 = vpop.permute.xlu1 %630  ;;  %v625_v47 = vpop.permute.xlu0 %624 }
 0x31b   : > { %v633_v48 = vmul.f32 %v631_v44, %v1720_v27  ;;  %v627_v50 = vmul.f32 %v625_v47, %v1723_v28 }
 0x31d   : > { %v634_v52 = vmul.f32 %v633_v48, %v619_v51  ;;  %v628_v53 = vmul.f32 %v627_v50, %v619_v51 }
 0x31e   : > { %v643_v54 = vpop.permute.xlu1 %642  ;;  %v637_v55 = vpop.permute.xlu0 %636 }
 0x31f   : > { %v645_v57 = vmul.f32 %v643_v54, %v1730_v33  ;;  %v639_v58 = vmul.f32 %v637_v55, %v1733_v34  ;;  %v635_v59 = vadd.f32 %v634_v52, %v621_v56  ;;  %v629_v27 = vadd.f32 %v628_v53, %v621_v56 }
 0x321   : > { %v646_v60 = vmul.f32 %v645_v57, %v619_v51  ;;  %v640_v28 = vmul.f32 %v639_v58, %v619_v51  ;;  %v757_v61 = vrot.slane %v635_v59, %v1795_v17  ;;  %v707_v62 = vrot.slane %v629_v27, %v1795_v17 }
 0x322   : > { %v655_v63 = vpop.permute.xlu1 %654  ;;  %v649_v2 = vpop.permute.xlu0 %648 }
 0x323   : > { %v657_v3 = vmul.f32 %v655_v63, %v1742_v39  ;;  %v651_v4 = vmul.f32 %v649_v2, %v1745_v40  ;;  %760 = vbcast.lane.b32.xlu1 %v757_v61, 272  ;;  %710 = vbcast.lane.b32.xlu0 %v707_v62, 264  ;;  %v647_v5 = vadd.f32 %v646_v60, %v621_v56 }
 0x324   : > { %v641_v33 = vadd.f32 %v640_v28, %v621_v56 }
 0x325   : > { %v658_v6 = vmul.f32 %v657_v3, %v619_v51  ;;  %v652_v34 = vmul.f32 %v651_v4, %v619_v51  ;;  %v857_v8 = vrot.slane %v647_v5, %v1795_v17 }
 0x326   : > { %v667_v9 = vpop.permute.xlu1 %666  ;;  %v661_v10 = vpop.permute.xlu0 %660  ;;  %v807_v11 = vrot.slane %v641_v33, %v1795_v17 }
 0x327   : > { %v669_v15 = vmul.f32 %v667_v9, %v1754_v45  ;;  %v663_v39 = vmul.f32 %v661_v10, %v1757_v46  ;;  %860 = vbcast.lane.b32.xlu1 %v857_v8, 288  ;;  %v659_v40 = vadd.f32 %v658_v6, %v621_v56  ;;  %v653_v16 = vadd.f32 %v652_v34, %v621_v56 }
 0x328   : > { %810 = vbcast.lane.b32.xlu0 %v807_v11, 280 }
 0x329   : > { %v670_v18 = vmul.f32 %v669_v15, %v619_v51  ;;  %v664_v19 = vmul.f32 %v663_v39, %v619_v51  ;;  %v956_v20 = vrot.slane %v659_v40, %v1795_v17  ;;  %v906_v21 = vrot.slane %v653_v16, %v1795_v17 }
 0x32a   : > { %v306_v23 = vpop.permute.xlu1 %305  ;;  %v304_v1 = vpop.permute.xlu0 %303 }
 0x32b   : > { %959 = vbcast.lane.b32.xlu1 %v956_v20, 304  ;;  %v671_v49 = vadd.f32 %v670_v18, %v621_v56  ;;  %v665_v45 = vadd.f32 %v664_v19, %v621_v56  ;;  %315 = vst.msk [vmem:[#allocation2 + $0x10] sm:$0xff] %vm307_vm3, %v306_v23  ;;  %v1843_v46 = vsel %vm307_vm3, %v304_v1, %v306_v23 }
 0x32c   : > { %313 = vst.msk [vmem:[#allocation2] sm:$0xff] %vm312_vm4, %v304_v1  ;;  %909 = vbcast.lane.b32.xlu0 %v906_v21, 296 }
 0x32d   : > { %v1056_v13 = vrot.slane %v671_v49, %v1795_v17  ;;  %v1006_v0 = vrot.slane %v665_v45, %v1795_v17 }
 0x32e   : > { %v724_v24 = vpop.permute.xlu1 %723  ;;  %v722_v25 = vpop.permute.xlu0 %721 }
 0x32f   : > { %1059 = vbcast.lane.b32.xlu1 %v1056_v13, 320  ;;  %v726_v52 = vsel %vm725_vm5, %v722_v25, %v724_v24 }
 0x330   : > { %1009 = vbcast.lane.b32.xlu0 %v1006_v0, 312  ;;  %v731_v56 = vmul.f32 %v726_v52, %v1843_v46 }
 0x332   : > { %v774_v29 = vpop.permute.xlu1 %773  ;;  %v772_v30 = vpop.permute.xlu0 %771  ;;  %v1867_v55 = vld [vmem:[#allocation2 + $0x10] sm:$0xff] }
 0x333   : > { %v1860_v50 = vld [vmem:[#allocation2] sm:$0xff]  ;;  %v732_v27 = vmul.f32 %v724_v24, %v1867_v55  ;;  %v776_v28 = vsel %vm775_vm6, %v772_v30, %v774_v29  ;;  %v782_v3 = vmul.f32 %v774_v29, %v1867_v55 }
 0x334   : > { %680 = vbcast.lane.b32.xlu0 %v678_v26, 256  ;;  %v730_v53 = vmul.f32 %v722_v25, %v1860_v50  ;;  %v780_v61 = vmul.f32 %v772_v30, %v1860_v50  ;;  %v781_v2 = vmul.f32 %v776_v28, %v1843_v46 }
 0x336   : > { %v822_v31 = vpop.permute.xlu1 %821  ;;  %v824_v32 = vpop.permute.xlu0 %823 }
 0x337   : > { %v826_v4 = vsel %vm825_vm7, %v822_v31, %v824_v32  ;;  %v830_v34 = vmul.f32 %v822_v31, %v1860_v50  ;;  %v832_v11 = vmul.f32 %v824_v32, %v1867_v55 }
 0x338   : > { %v831_v8 = vmul.f32 %v826_v4, %v1843_v46 }
 0x33a   : > { %v874_v35 = vpop.permute.xlu1 %873  ;;  %v872_v36 = vpop.permute.xlu0 %871 }
 0x33b   : > { %v875_v37 = vsel %vm307_vm3, %v872_v36, %v874_v35  ;;  %v879_v15 = vmul.f32 %v872_v36, %v1860_v50  ;;  %v881_v16 = vmul.f32 %v874_v35, %v1867_v55 }
 0x33c   : > { %v880_v38 = vmul.f32 %v875_v37, %v1843_v46 }
 0x33e   : > { %v1850_v41 = vpop.permute.xlu0 %922  ;;  %v921_v42 = vpop.permute.xlu1 %920 }
 0x33f   : > { %v925_v18 = vsel %vm924_vm8, %v921_v42, %v1850_v41  ;;  %v929_v22 = vmul.f32 %v921_v42, %v1860_v50  ;;  %v931_v45 = vmul.f32 %v1850_v41, %v1867_v55 }
 0x340   : > { %v930_v23 = vmul.f32 %v925_v18, %v1843_v46 }
 0x342   : > { %v1852_v43 = vpop.permute.xlu0 %970  ;;  %v1854_v44 = vpop.permute.xlu1 %972 }
 0x343   : > { %v975_v0 = vsel %vm974_vm9, %v1852_v43, %v1854_v44  ;;  %v979_v7 = vmul.f32 %v1852_v43, %v1860_v50  ;;  %v981_v29 = vmul.f32 %v1854_v44, %v1867_v55 }
 0x344   : > { %v980_v26 = vmul.f32 %v975_v0, %v1843_v46 }
 0x346   : > { %v1856_v47 = vpop.permute.xlu0 %1022  ;;  %v1858_v48 = vpop.permute.xlu1 %1020 }
 0x347   : > { %v1025_v30 = vsel %vm1024_vm10, %v1858_v48, %v1856_v47  ;;  %v1029_v36 = vmul.f32 %v1858_v48, %v1860_v50  ;;  %v1031_v42 = vmul.f32 %v1856_v47, %v1867_v55 }
 0x348   : > { %v1030_v37 = vmul.f32 %v1025_v30, %v1843_v46 }
 0x34a   : > { %v1862_v51 = vpop.permute.xlu0 %1070  ;;  %v1865_v54 = vpop.permute.xlu1 %1072 }
 0x34b   : > { %v1074_v44 = vsel %vm299_vm2, %v1862_v51, %v1865_v54  ;;  %v1078_v48 = vmul.f32 %v1862_v51, %v1860_v50  ;;  %vm1093_vm2 = vcmask 769024  }
 0x395   : > { %v711_v57 = vpop.permute.xlu0 %710  ;;  %v761_v60 = vpop.permute.xlu1 %760 }
 0x396   : > { %v733_v58 = vmul.f32 %v730_v53, %v711_v57  ;;  %v734_v59 = vmul.f32 %v731_v56, %v711_v57  ;;  %v735_v62 = vmul.f32 %v732_v27, %v711_v57  ;;  %v783_v63 = vmul.f32 %v780_v61, %v761_v60 }
 0x397   : > { %v784_v5 = vmul.f32 %v781_v2, %v761_v60  ;;  %v785_v33 = vmul.f32 %v782_v3, %v761_v60  ;;  %v1079_v56 = vmul.f32 %v1074_v44, %v1843_v46  ;;  %v1080_v57 = vmul.f32 %v1865_v54, %v1867_v55  ;;  %v674_v54 = vld [vmem:[#allocation8] ss:$8 sm:$0x3] }
 0x398   : > { %739 = vrot.lane.b32.xlu1 %v733_v58, %s1506_s1  ;;  %741 = vrot.lane.b32.xlu0 %v734_v59, %s1506_s1  ;;  %v686_v55 = vrot.slane %v674_v54, %v1795_v17 }
 0x399   : > { %v861_v12 = vpop.permute.xlu1 %860 }
 0x39a   : > { %v811_v6 = vpop.permute.xlu0 %810  ;;  %v882_v40 = vmul.f32 %v879_v15, %v861_v12  ;;  %v883_v19 = vmul.f32 %v880_v38, %v861_v12  ;;  %v884_v20 = vmul.f32 %v881_v16, %v861_v12 }
 0x39b   : > { %v833_v9 = vmul.f32 %v830_v34, %v811_v6  ;;  %v834_v10 = vmul.f32 %v831_v8, %v811_v6  ;;  %v835_v39 = vmul.f32 %v832_v11, %v811_v6  ;;  %v690_v34 = vrot.slane %v674_v54, %v1791_v14 }
 0x39c   : > { %743 = vrot.lane.b32.xlu1 %v735_v62, %s1506_s1  ;;  %789 = vrot.lane.b32.xlu0 %v783_v63, %s1507_s27  ;;  %s1412_s1 = sshll.u32 %s1512_s26, 4  ;;  %s1413_s1 = int_to_ptr.vmem [resolvable:$false] %s1412_s1 }
 0x39d   : > { %v960_v13 = vpop.permute.xlu1 %959  ;;  %v694_v11 = vmul.f32 %v690_v34, %v1843_v46  ;;  %p1415_p4 = scmp.lt.s32.totalorder %s1118_s11, %s1413_s1 }
 0x39e   : > { %v910_v21 = vpop.permute.xlu0 %909  ;;  %v982_v25 = vmul.f32 %v979_v7, %v960_v13  ;;  %v983_v31 = vmul.f32 %v980_v26, %v960_v13  ;;  %v984_v32 = vmul.f32 %v981_v29, %v960_v13 }
 0x39f   : > { %v932_v1 = vmul.f32 %v929_v22, %v910_v21  ;;  %v933_v49 = vmul.f32 %v930_v23, %v910_v21  ;;  %v934_v24 = vmul.f32 %v931_v45, %v910_v21 }
 0x3a0   : > { %791 = vrot.lane.b32.xlu1 %v784_v5, %s1507_s27  ;;  %793 = vrot.lane.b32.xlu0 %v785_v33, %s1507_s27  ;;  %s1414_s27 = scalar_lea.vmem %s1413_s1, 512 }
 0x3a1   : > { %v1060_v43 = vpop.permute.xlu1 %1059  ;;  %p1416_p6 = scmp.lt.s32.totalorder %s1414_s27, %s1408_s25 }
 0x3a2   : > { %v1010_v35 = vpop.permute.xlu0 %1009  ;;  %v1081_v53 = vmul.f32 %v1078_v48, %v1060_v43  ;;  %v1082_v47 = vmul.f32 %v1079_v56, %v1060_v43  ;;  %v1083_v58 = vmul.f32 %v1080_v57, %v1060_v43 }
 0x3a3   : > { %v1032_v38 = vmul.f32 %v1029_v36, %v1010_v35  ;;  %v1033_v41 = vmul.f32 %v1030_v37, %v1010_v35  ;;  %v1034_v52 = vmul.f32 %v1031_v42, %v1010_v35  ;;  %p1417_p9 = por %p1416_p6, %p1415_p4 }
 0x3a4   : > { %839 = vrot.lane.b32.xlu1 %v833_v9, %s1484_s13  ;;  %841 = vrot.lane.b32.xlu0 %v834_v10, %s1484_s13  ;;  %v693_v9 = vmul.f32 %v1860_v50, %v686_v55 }
 0x3a5   : > { %p1418_p12 = pnand %p1417_p9, %p1411_p2 }
 0x3a6   : > { %v681_v59 = vpop.permute.xlu0 %680 }
 0x3a7   : > { %v696_v16 = vmul.f32 %v694_v11, %v681_v59 }
 0x3a8   : > { %843 = vrot.lane.b32.xlu1 %v835_v39, %s1484_s13  ;;  %888 = vrot.lane.b32.xlu0 %v882_v40, %s1508_s29  ;;  %s1509_s13 = smov 110   ;;  %v695_v39 = vmul.f32 %v693_v9, %v681_v59 }
 0x3ac   : > { %890 = vrot.lane.b32.xlu1 %v883_v19, %s1508_s29  ;;  %892 = vrot.lane.b32.xlu0 %v884_v20, %s1508_s29 }
 0x3b0   : > { %938 = vrot.lane.b32.xlu1 %v932_v1, %s1509_s13  ;;  %940 = vrot.lane.b32.xlu0 %v933_v49, %s1509_s13 }
 0x3b4   : > { %942 = vrot.lane.b32.xlu1 %v934_v24, %s1509_s13  ;;  %988 = vrot.lane.b32.xlu0 %v982_v25, %s1487_s17 }
 0x3b8   : > { %990 = vrot.lane.b32.xlu1 %v983_v31, %s1487_s17  ;;  %992 = vrot.lane.b32.xlu0 %v984_v32, %s1487_s17  ;;  %s1511_s17 = smov 94  }
 0x3bc   : > { %1038 = vrot.lane.b32.xlu1 %v1032_v38, %s1510_s15  ;;  %1040 = vrot.lane.b32.xlu0 %v1033_v41, %s1510_s15 }
 0x3c0   : > { %1042 = vrot.lane.b32.xlu1 %v1034_v52, %s1510_s15  ;;  %1087 = vrot.lane.b32.xlu0 %v1081_v53, %s1511_s17 }
 0x3c4   : > { %1089 = vrot.lane.b32.xlu1 %v1082_v47, %s1511_s17  ;;  %1091 = vrot.lane.b32.xlu0 %v1083_v58, %s1511_s17 }
 0x40a   : > { %v740_v27 = vpop.permute.xlu1 %739  ;;  %v742_v60 = vpop.permute.xlu0 %741 }
 0x40b   : > { %v746_v12 = vsel %vm745_vm11, %v740_v27, %v742_v60 }
 0x40c   : > { %v750_v19 = vadd.f32 %v746_v12, %v695_v39 }
 0x40e   : > { %v744_v28 = vpop.permute.xlu1 %743  ;;  %v790_v51 = vpop.permute.xlu0 %789 }
 0x40f   : > { %v747_v40 = vsel %vm745_vm11, %v742_v60, %v744_v28 }
 0x410   : > { %v751_v14 = vadd.f32 %v747_v40, %v696_v16 }
 0x412   : > { %v792_v61 = vpop.permute.xlu1 %791  ;;  %v794_v62 = vpop.permute.xlu0 %793 }
 0x413   : > { %v796_v18 = vsel %vm795_vm12, %v790_v51, %v792_v61  ;;  %v797_v17 = vsel %vm795_vm12, %v792_v61, %v794_v62 }
 0x414   : > { %v800_v23 = vadd.f32 %v796_v18, %v750_v19  ;;  %v801_v1 = vadd.f32 %v797_v17, %v751_v14 }
 0x416   : > { %v840_v63 = vpop.permute.xlu1 %839  ;;  %v842_v2 = vpop.permute.xlu0 %841 }
 0x417   : > { %v846_v21 = vsel %vm845_vm13, %v840_v63, %v842_v2 }
 0x418   : > { %v850_v46 = vadd.f32 %v846_v21, %v800_v23 }
 0x41a   : > { %v844_v3 = vpop.permute.xlu1 %843  ;;  %v889_v4 = vpop.permute.xlu0 %888 }
 0x41b   : > { %v847_v50 = vsel %vm845_vm13, %v842_v2, %v844_v3 }
 0x41c   : > { %v851_v0 = vadd.f32 %v847_v50, %v801_v1 }
 0x41e   : > { %v891_v5 = vpop.permute.xlu1 %890  ;;  %v893_v33 = vpop.permute.xlu0 %892 }
 0x41f   : > { %v895_v49 = vsel %vm894_vm14, %v889_v4, %v891_v5  ;;  %v896_v45 = vsel %vm894_vm14, %v891_v5, %v893_v33 }
 0x420   : > { %v899_v25 = vadd.f32 %v895_v49, %v850_v46  ;;  %v900_v29 = vadd.f32 %v896_v45, %v851_v0 }
 0x422   : > { %v939_v6 = vpop.permute.xlu1 %938  ;;  %v941_v8 = vpop.permute.xlu0 %940 }
 0x423   : > { %v945_v7 = vsel %vm944_vm15, %v939_v6, %v941_v8 }
 0x424   : > { %v949_v31 = vadd.f32 %v945_v7, %v899_v25 }
 0x426   : > { %v943_v10 = vpop.permute.xlu1 %942  ;;  %v989_v15 = vpop.permute.xlu0 %988 }
 0x427   : > { %v946_v26 = vsel %vm944_vm15, %v941_v8, %v943_v10 }
 0x428   : > { %v950_v36 = vadd.f32 %v946_v26, %v900_v29 }
 0x42a   : > { %v991_v20 = vpop.permute.xlu1 %990  ;;  %v993_v22 = vpop.permute.xlu0 %992 }
 0x42b   : > { %v995_v30 = vsel %vm994_vm0, %v989_v15, %v991_v20  ;;  %v996_v32 = vsel %vm994_vm0, %v991_v20, %v993_v22 }
 0x42c   : > { %v999_v41 = vadd.f32 %v995_v30, %v949_v31  ;;  %v1000_v43 = vadd.f32 %v996_v32, %v950_v36 }
 0x42e   : > { %v1039_v13 = vpop.permute.xlu1 %1038  ;;  %v1041_v24 = vpop.permute.xlu0 %1040 }
 0x42f   : > { %v1045_v37 = vsel %vm1044_vm1, %v1039_v13, %v1041_v24 }
 0x430   : > { %v1049_v44 = vadd.f32 %v1045_v37, %v999_v41 }
 0x432   : > { %v1043_v35 = vpop.permute.xlu1 %1042  ;;  %v1088_v38 = vpop.permute.xlu0 %1087 }
 0x433   : > { %v1046_v42 = vsel %vm1044_vm1, %v1041_v24, %v1043_v35 }
 0x434   : > { %v1050_v52 = vadd.f32 %v1046_v42, %v1000_v43 }
 0x436   : > { %v1090_v48 = vpop.permute.xlu1 %1089  ;;  %v1092_v56 = vpop.permute.xlu0 %1091 }
 0x437   : > { %v1094_v53 = vsel %vm1093_vm2, %v1088_v38, %v1090_v48  ;;  %v1095_v47 = vsel %vm1093_vm2, %v1090_v48, %v1092_v56 }
 0x438   : > { %v1098_v57 = vadd.f32 %v1094_v53, %v1049_v44  ;;  %v1099_v58 = vadd.f32 %v1095_v47, %v1050_v52 }
 0x43a   : > { %1100 = vst [vmem:[%s294_s9] sm:$0xff] %v1098_v57  ;;  %1101 = vst [vmem:[%s294_s9 + $0x8] sm:$0xff] %v1099_v58 }
 0x43b   : > { %1421 = shalt.err (!%p1418_p12)
}
 0x43c   : > { %s1422_s29 = scalar_lea.hbm %s1922_s8, 256  ;;  %s1426_s15 = scalar_lea.hbm %s1965_s6, 512 }
 0x43d   : > { %p1423_p3 = scmp.ne.s32.totalorder %s1922_s8, %s1422_s29  ;;  %p1427_p5 = scmp.lt.s32.totalorder %s1922_s8, %s1965_s6 }
 0x43e   : > { %p1428_p8 = scmp.lt.s32.totalorder %s1426_s15, %s1422_s29 }
 0x43f   : > { %p1424_p7 = pnand %p1423_p3, %p1985_p0 }
 0x440   : > { %p1429_p11 = por %p1428_p8, %p1427_p5 }
 0x441   : > { %p1425_p10 = pneg %p1424_p7 }
 0x443   : > { %p1430_p13 = pnand %p1429_p11, %p1425_p10 }
 0x445   : > { %1433 = shalt.err (!%p1430_p13)
}
 0x446   : > { %1236 = dma.vmem_to_hbm [thread:$0]  (%p1985_p0), %s1118_s11, 256, %s1922_s8, %s1103_s14  }
 0x447 PF: > { %s1129_s16 = sand.u32 1, %s1464_s21   ;;  %p1986_p1 = scmp.ne.s32.totalorder %s1973_s28, 0 }
 0x448   : > { %p1987_p2 = scmp.ge.s32.totalorder %s1476_s24, 2  ;;  %s1130_s9 = scalar_lea.sflag [#allocation5], %s1129_s16 }
 0x44a   : > { %p1250_p4 = pnand %p1987_p2, %p1986_p1 }
 0x44c   : > { %p1251_p6 = pneg %p1250_p4 }
 0x44e   : > { %1459 = dma.done.wait (%p1251_p6), %s1130_s9, 256  }
 0x44f   : > { %1461 = vsyncadd (%p1251_p6), %s1130_s9, 4294967040  ;;  %p20_p9 = scmp.ge.s32.totalorder %s1620_s19, 4   ;;  %s1988_s21 = smov %s1468_s22 }
 0x450   : > { %s1989_s22 = smov %s1472_s23  ;;  %s1990_s23 = smov %s1636_s7 }
 0x451   : > { %s1991_s24 = smov %s1620_s19  ;;  %22 = sbr.rel (!%p20_p9) target bundleno = 8 (0x8), region = 105 }
 0x456   :  { %1135 = vsyncpa [#allocation4], 1 }
 0x457   :  { %1137 = vsyncpa [#allocation4 + $0x1], 1 }
 0x458   :  { %1138 = vsyncpa [#allocation7], 1 }
 0x459   :  { %1139 = vsyncpa [#allocation5], 1 }
 0x45a   :  { %1141 = vsyncpa [#allocation5 + $0x1], 1 }

</bundles_post_ra>
